<compile_context>
chip_gen: v7x
topology: tpu7x:2x2x1
jax: 0.10.0
libtpu: 0.0.40
codegen_flags: <defaults>
</compile_context>

<pallas_src>
import functools

import jax
import jax.numpy as jnp
from jax.experimental import pallas as pl
from jax.experimental.pallas import tpu as pltpu


# TODO(synk): `intersection_over_union` is imported (not defined) in the
# reference; the standard YOLOv1 IoU (midpoint / corner formats, 1e-6 eps,
# abs() areas, clamped intersection) is implemented here.
def _iou_parts(px, py, pw, ph, tx, ty, tw, th, fmt):
    """IoU from per-component arrays (all the same shape); returns same shape."""
    if fmt == "midpoint":
        p_x1 = px - pw * 0.5
        p_y1 = py - ph * 0.5
        p_x2 = px + pw * 0.5
        p_y2 = py + ph * 0.5
        t_x1 = tx - tw * 0.5
        t_y1 = ty - th * 0.5
        t_x2 = tx + tw * 0.5
        t_y2 = ty + th * 0.5
    else:  # "corner"
        p_x1, p_y1, p_x2, p_y2 = px, py, pw, ph
        t_x1, t_y1, t_x2, t_y2 = tx, ty, tw, th

    x1 = jnp.maximum(p_x1, t_x1)
    y1 = jnp.maximum(p_y1, t_y1)
    x2 = jnp.minimum(p_x2, t_x2)
    y2 = jnp.minimum(p_y2, t_y2)
    inter = jnp.maximum(x2 - x1, 0.0) * jnp.maximum(y2 - y1, 0.0)
    a_p = jnp.abs((p_x2 - p_x1) * (p_y2 - p_y1))
    a_t = jnp.abs((t_x2 - t_x1) * (t_y2 - t_y1))
    return inter / (a_p + a_t - inter + 1e-6)


def yolo_loss_kernel(yp_ref, yt_ref, out_ref, *, last_row):
    i = pl.program_id(0)

    @pl.when(i == 0)
    def _():
        out_ref[...] = jnp.zeros_like(out_ref)

    # ---------------- confidence loss over this row tile ----------------
    # yp cols: [c1..c20, conf1, box1(x,y,w,h), conf2, box2(x,y,w,h)]  (T, 30)
    # yt cols: [c1..c20, exists, tbox(x,y,w,h)]                        (T, 25)
    yp = yp_ref[...].astype(jnp.float32)
    yt = yt_ref[...].astype(jnp.float32)

    conf1 = yp[:, 20:21]
    conf2 = yp[:, 25:26]
    exists = yt[:, 20:21]
    tb = (yt[:, 21:22], yt[:, 22:23], yt[:, 23:24], yt[:, 24:25])

    iou_b1 = _iou_parts(yp[:, 21:22], yp[:, 22:23], yp[:, 23:24], yp[:, 24:25],
                        *tb, "midpoint")
    iou_b2 = _iou_parts(yp[:, 26:27], yp[:, 27:28], yp[:, 28:29], yp[:, 29:30],
                        *tb, "corner")
    bestbox = (iou_b2 > iou_b1).astype(jnp.float32)  # argmax; ties -> box 1

    pred_box = bestbox * conf2 + (1.0 - bestbox) * conf1
    obj_term = (exists * pred_box - exists * conf1) ** 2
    one_m_exists = 1.0 - exists
    noobj_term = ((one_m_exists * conf1 - one_m_exists * exists) ** 2
                  + (one_m_exists * conf2 - one_m_exists * exists) ** 2)

    # Zero-padded rows (large-batch path) contribute exactly 0 to both terms.
    out_ref[...] += jnp.sum(obj_term + 0.5 * noobj_term, keepdims=True)

    # ----- last-cell localization + classification (reference loop leftovers) -----
    @pl.when(i == pl.num_programs(0) - 1)
    def _():
        ypl = yp_ref[last_row:last_row + 1, :].astype(jnp.float32)  # (1, 30)
        ytl = yt_ref[last_row:last_row + 1, :].astype(jnp.float32)  # (1, 25)

        p1 = (ypl[:, 0:1], ypl[:, 1:2], ypl[:, 2:3], ypl[:, 3:4])
        p2 = (ypl[:, 5:6], ypl[:, 6:7], ypl[:, 7:8], ypl[:, 8:9])
        tbl = (ytl[:, 0:1], ytl[:, 1:2], ytl[:, 2:3], ytl[:, 3:4])
        class_pred = ypl[:, 10:30]
        class_true = ytl[:, 5:25]

        iou1 = _iou_parts(*p1, *tbl, "midpoint")
        iou2 = _iou_parts(*p2, *tbl, "midpoint")
        resp_is_1 = iou1 >= iou2  # (1, 1) bool
        rx = jnp.where(resp_is_1, p1[0], p2[0])
        ry = jnp.where(resp_is_1, p1[1], p2[1])
        rw = jnp.where(resp_is_1, p1[2], p2[2])
        rh = jnp.where(resp_is_1, p1[3], p2[3])

        all_zero = ((tbl[0] == 0.0) & (tbl[1] == 0.0)
                    & (tbl[2] == 0.0) & (tbl[3] == 0.0))
        obj_exist = jnp.where(all_zero, 0.0, 1.0)  # (1, 1)

        err_x = (tbl[0] - rx) ** 2
        err_y = (tbl[1] - ry) ** 2
        err_w = (jnp.sqrt(tbl[2]) - jnp.sqrt(rw)) ** 2
        err_h = (jnp.sqrt(tbl[3]) - jnp.sqrt(rh)) ** 2
        # Reference zeroes NaNs (sqrt of negative w/h) before summation.
        err_w = jnp.where(jnp.isnan(err_w), 0.0, err_w)
        err_h = jnp.where(jnp.isnan(err_h), 0.0, err_h)
        # weighted_localization_err already includes *5.0 inside localizationLoss;
        # forward multiplies by lambda_coord=5 again (intentional 25x, per spec).
        weighted_loc = (err_x + err_y + err_w + err_h) * obj_exist * 5.0

        class_err = jnp.sum((class_true - class_pred) ** 2,
                            keepdims=True) * obj_exist

        out_ref[...] += 5.0 * weighted_loc + class_err


def _round_up(x, m):
    return ((x + m - 1) // m) * m


def yolo_loss(y_pred, y_true, *, max_tile_rows=8192):
    """y_pred: (B, S, S, 30), y_true: (B, S, S, 25) with S*S == 49."""
    yp = y_pred.reshape(-1, 30)  # (N, 30), original dtype, no-copy reshape
    yt = y_true.reshape(-1, 25)  # (N, 25)
    n = yp.shape[0]

    if n <= max_tile_rows:
        # Common case: whole batch is one resident block (block dims equal the
        # full array dims => legal regardless of (8,128) multiples), one grid
        # step, no padding, no wrapper-side data movement at all.
        row_tile = n
        n_pad = n
    else:
        # Large-batch fallback: tile rows; 8-aligned sublane tile, zero-pad
        # rows (zero cells contribute exactly 0 to the confidence terms).
        row_tile = max_tile_rows - (max_tile_rows % 8)
        assert row_tile % 8 == 0 and row_tile > 0
        n_pad = _round_up(n, row_tile)
        yp = jnp.pad(yp, ((0, n_pad - n), (0, 0)))
        yt = jnp.pad(yt, ((0, n_pad - n), (0, 0)))
    num_tiles = n_pad // row_tile

    # The last real cell always lies in the last tile (padding is appended).
    last_row = (n - 1) - (num_tiles - 1) * row_tile

    kernel = functools.partial(yolo_loss_kernel, last_row=last_row)

    out = pl.pallas_call(
        kernel,
        out_shape=jax.ShapeDtypeStruct((1, 1), jnp.float32),
        grid_spec=pltpu.PrefetchScalarGridSpec(
            num_scalar_prefetch=0,
            grid=(num_tiles,),
            in_specs=[
                pl.BlockSpec((row_tile, 30), lambda i: (i, 0)),  # pred rows
                pl.BlockSpec((row_tile, 25), lambda i: (i, 0)),  # true rows
            ],
            # Constant block index -> output stays VMEM-resident across the
            # grid and doubles as the accumulator (no scratch needed).
            out_specs=pl.BlockSpec((1, 1), lambda i: (0, 0)),
        ),
        compiler_params=pltpu.CompilerParams(
            dimension_semantics=("arbitrary",)),
    )(yp, yt)
    return out[0, 0]


if __name__ == "__main__":
    key = jax.random.PRNGKey(0)
    k1, k2 = jax.random.split(key)
    B, S = 2, 7  # 7x7 = 49 grid cells, as required by the reshape in forward()
    y_pred = jax.random.normal(k1, (B, S, S, 30), dtype=jnp.float32)
    y_true = jax.random.normal(k2, (B, S, S, 25), dtype=jnp.float32)

    loss = jax.jit(yolo_loss)(y_pred, y_true)
    jax.block_until_ready(loss)
    print("KERNEL_OK")
</pallas_src>

<mosaic_0001>
module attributes {stable_mosaic.version = 11 : i64} {
  func.func @yolo_loss_kernel(%arg0: i32, %arg1: memref<98x30xf32, #tpu.memory_space<vmem>>, %arg2: memref<98x25xf32, #tpu.memory_space<vmem>>, %arg3: memref<1x1xf32, #tpu.memory_space<vmem>>) attributes {dimension_semantics = [#tpu.dimension_semantics<arbitrary>], iteration_bounds = array<i64: 1>, scalar_prefetch = 0 : i64, scratch_operands = 0 : i64, tpu.core_type = #tpu.core_type<tc>, window_params = [{transform_indices = @transform_0, window_bounds = array<i64: 98, 30>}, {transform_indices = @transform_1, window_bounds = array<i64: 98, 25>}, {pipeline_mode = #tpu.pipeline_mode<synchronous>, transform_indices = @transform_2, window_bounds = array<i64: 1, 1>}]} {
    %c0_i32 = arith.constant 0 : i32
    %0 = arith.cmpi eq, %arg0, %c0_i32 : i32
    %1 = arith.extui %0 : i1 to i32
    %c0_i32_0 = arith.constant 0 : i32
    %2 = arith.cmpi ne, %1, %c0_i32_0 : i32
    scf.if %2 {
      %cst_27 = arith.constant 0.000000e+00 : f32
      %129 = vector.broadcast %cst_27 : f32 to vector<1x1xf32>
      %c0_28 = arith.constant 0 : index
      %c0_29 = arith.constant 0 : index
      %130 = vector.load %arg3[%c0_28, %c0_29] : memref<1x1xf32, #tpu.memory_space<vmem>>, vector<1x1xf32>
      tpu.vector_store %arg3[%c0_28, %c0_29], %129 {strides = array<i32>} : memref<1x1xf32, #tpu.memory_space<vmem>>, vector<1x1xf32>,
    } else {
    }
    %c0 = arith.constant 0 : index
    %c0_1 = arith.constant 0 : index
    %3 = vector.load %arg1[%c0, %c0_1] : memref<98x30xf32, #tpu.memory_space<vmem>>, vector<98x30xf32>
    %c0_2 = arith.constant 0 : index
    %c0_3 = arith.constant 0 : index
    %4 = vector.load %arg2[%c0_2, %c0_3] : memref<98x25xf32, #tpu.memory_space<vmem>>, vector<98x25xf32>
    %5 = vector.extract_strided_slice %3 {offsets = [0, 20], sizes = [98, 1], strides = [1, 1]} : vector<98x30xf32> to vector<98x1xf32>
    %6 = vector.extract_strided_slice %3 {offsets = [0, 25], sizes = [98, 1], strides = [1, 1]} : vector<98x30xf32> to vector<98x1xf32>
    %7 = vector.extract_strided_slice %4 {offsets = [0, 20], sizes = [98, 1], strides = [1, 1]} : vector<98x25xf32> to vector<98x1xf32>
    %8 = vector.extract_strided_slice %4 {offsets = [0, 21], sizes = [98, 1], strides = [1, 1]} : vector<98x25xf32> to vector<98x1xf32>
    %9 = vector.extract_strided_slice %4 {offsets = [0, 22], sizes = [98, 1], strides = [1, 1]} : vector<98x25xf32> to vector<98x1xf32>
    %10 = vector.extract_strided_slice %4 {offsets = [0, 23], sizes = [98, 1], strides = [1, 1]} : vector<98x25xf32> to vector<98x1xf32>
    %11 = vector.extract_strided_slice %4 {offsets = [0, 24], sizes = [98, 1], strides = [1, 1]} : vector<98x25xf32> to vector<98x1xf32>
    %12 = vector.extract_strided_slice %3 {offsets = [0, 21], sizes = [98, 1], strides = [1, 1]} : vector<98x30xf32> to vector<98x1xf32>
    %13 = vector.extract_strided_slice %3 {offsets = [0, 22], sizes = [98, 1], strides = [1, 1]} : vector<98x30xf32> to vector<98x1xf32>
    %14 = vector.extract_strided_slice %3 {offsets = [0, 23], sizes = [98, 1], strides = [1, 1]} : vector<98x30xf32> to vector<98x1xf32>
    %15 = vector.extract_strided_slice %3 {offsets = [0, 24], sizes = [98, 1], strides = [1, 1]} : vector<98x30xf32> to vector<98x1xf32>
    %cst = arith.constant 5.000000e-01 : f32
    %16 = vector.broadcast %cst : f32 to vector<98x1xf32>
    %17 = arith.mulf %14, %16 : vector<98x1xf32>
    %18 = arith.subf %12, %17 : vector<98x1xf32>
    %cst_4 = arith.constant 5.000000e-01 : f32
    %19 = vector.broadcast %cst_4 : f32 to vector<98x1xf32>
    %20 = arith.mulf %15, %19 : vector<98x1xf32>
    %21 = arith.subf %13, %20 : vector<98x1xf32>
    %cst_5 = arith.constant 5.000000e-01 : f32
    %22 = vector.broadcast %cst_5 : f32 to vector<98x1xf32>
    %23 = arith.mulf %14, %22 : vector<98x1xf32>
    %24 = arith.addf %12, %23 : vector<98x1xf32>
    %cst_6 = arith.constant 5.000000e-01 : f32
    %25 = vector.broadcast %cst_6 : f32 to vector<98x1xf32>
    %26 = arith.mulf %15, %25 : vector<98x1xf32>
    %27 = arith.addf %13, %26 : vector<98x1xf32>
    %cst_7 = arith.constant 5.000000e-01 : f32
    %28 = vector.broadcast %cst_7 : f32 to vector<98x1xf32>
    %29 = arith.mulf %10, %28 : vector<98x1xf32>
    %30 = arith.subf %8, %29 : vector<98x1xf32>
    %cst_8 = arith.constant 5.000000e-01 : f32
    %31 = vector.broadcast %cst_8 : f32 to vector<98x1xf32>
    %32 = arith.mulf %11, %31 : vector<98x1xf32>
    %33 = arith.subf %9, %32 : vector<98x1xf32>
    %cst_9 = arith.constant 5.000000e-01 : f32
    %34 = vector.broadcast %cst_9 : f32 to vector<98x1xf32>
    %35 = arith.mulf %10, %34 : vector<98x1xf32>
    %36 = arith.addf %8, %35 : vector<98x1xf32>
    %cst_10 = arith.constant 5.000000e-01 : f32
    %37 = vector.broadcast %cst_10 : f32 to vector<98x1xf32>
    %38 = arith.mulf %11, %37 : vector<98x1xf32>
    %39 = arith.addf %9, %38 : vector<98x1xf32>
    %40 = arith.maximumf %18, %30 : vector<98x1xf32>
    %41 = arith.maximumf %21, %33 : vector<98x1xf32>
    %42 = arith.minimumf %24, %36 : vector<98x1xf32>
    %43 = arith.minimumf %27, %39 : vector<98x1xf32>
    %44 = arith.subf %42, %40 : vector<98x1xf32>
    %cst_11 = arith.constant 0.000000e+00 : f32
    %45 = vector.broadcast %cst_11 : f32 to vector<98x1xf32>
    %46 = arith.maximumf %44, %45 : vector<98x1xf32>
    %47 = arith.subf %43, %41 : vector<98x1xf32>
    %cst_12 = arith.constant 0.000000e+00 : f32
    %48 = vector.broadcast %cst_12 : f32 to vector<98x1xf32>
    %49 = arith.maximumf %47, %48 : vector<98x1xf32>
    %50 = arith.mulf %46, %49 : vector<98x1xf32>
    %51 = arith.subf %24, %18 : vector<98x1xf32>
    %52 = arith.subf %27, %21 : vector<98x1xf32>
    %53 = arith.mulf %51, %52 : vector<98x1xf32>
    %54 = math.absf %53 : vector<98x1xf32>
    %55 = arith.subf %36, %30 : vector<98x1xf32>
    %56 = arith.subf %39, %33 : vector<98x1xf32>
    %57 = arith.mulf %55, %56 : vector<98x1xf32>
    %58 = math.absf %57 : vector<98x1xf32>
    %59 = arith.addf %54, %58 : vector<98x1xf32>
    %60 = arith.subf %59, %50 : vector<98x1xf32>
    %cst_13 = arith.constant 9.99999997E-7 : f32
    %61 = vector.broadcast %cst_13 : f32 to vector<98x1xf32>
    %62 = arith.addf %60, %61 : vector<98x1xf32>
    %63 = arith.divf %50, %62 : vector<98x1xf32>
    %64 = vector.extract_strided_slice %3 {offsets = [0, 26], sizes = [98, 1], strides = [1, 1]} : vector<98x30xf32> to vector<98x1xf32>
    %65 = vector.extract_strided_slice %3 {offsets = [0, 27], sizes = [98, 1], strides = [1, 1]} : vector<98x30xf32> to vector<98x1xf32>
    %66 = vector.extract_strided_slice %3 {offsets = [0, 28], sizes = [98, 1], strides = [1, 1]} : vector<98x30xf32> to vector<98x1xf32>
    %67 = vector.extract_strided_slice %3 {offsets = [0, 29], sizes = [98, 1], strides = [1, 1]} : vector<98x30xf32> to vector<98x1xf32>
    %68 = arith.maximumf %64, %8 : vector<98x1xf32>
    %69 = arith.maximumf %65, %9 : vector<98x1xf32>
    %70 = arith.minimumf %66, %10 : vector<98x1xf32>
    %71 = arith.minimumf %67, %11 : vector<98x1xf32>
    %72 = arith.subf %70, %68 : vector<98x1xf32>
    %cst_14 = arith.constant 0.000000e+00 : f32
    %73 = vector.broadcast %cst_14 : f32 to vector<98x1xf32>
    %74 = arith.maximumf %72, %73 : vector<98x1xf32>
    %75 = arith.subf %71, %69 : vector<98x1xf32>
    %cst_15 = arith.constant 0.000000e+00 : f32
    %76 = vector.broadcast %cst_15 : f32 to vector<98x1xf32>
    %77 = arith.maximumf %75, %76 : vector<98x1xf32>
    %78 = arith.mulf %74, %77 : vector<98x1xf32>
    %79 = arith.subf %66, %64 : vector<98x1xf32>
    %80 = arith.subf %67, %65 : vector<98x1xf32>
    %81 = arith.mulf %79, %80 : vector<98x1xf32>
    %82 = math.absf %81 : vector<98x1xf32>
    %83 = arith.subf %10, %8 : vector<98x1xf32>
    %84 = arith.subf %11, %9 : vector<98x1xf32>
    %85 = arith.mulf %83, %84 : vector<98x1xf32>
    %86 = math.absf %85 : vector<98x1xf32>
    %87 = arith.addf %82, %86 : vector<98x1xf32>
    %88 = arith.subf %87, %78 : vector<98x1xf32>
    %cst_16 = arith.constant 9.99999997E-7 : f32
    %89 = vector.broadcast %cst_16 : f32 to vector<98x1xf32>
    %90 = arith.addf %88, %89 : vector<98x1xf32>
    %91 = arith.divf %78, %90 : vector<98x1xf32>
    %92 = arith.cmpf ogt, %91, %63 : vector<98x1xf32>
    %93 = arith.extui %92 : vector<98x1xi1> to vector<98x1xi32>
    %94 = arith.sitofp %93 : vector<98x1xi32> to vector<98x1xf32>
    %95 = arith.mulf %94, %6 : vector<98x1xf32>
    %cst_17 = arith.constant 1.000000e+00 : f32
    %96 = vector.broadcast %cst_17 : f32 to vector<98x1xf32>
    %97 = arith.subf %96, %94 : vector<98x1xf32>
    %98 = arith.mulf %97, %5 : vector<98x1xf32>
    %99 = arith.addf %95, %98 : vector<98x1xf32>
    %100 = arith.mulf %7, %99 : vector<98x1xf32>
    %101 = arith.mulf %7, %5 : vector<98x1xf32>
    %102 = arith.subf %100, %101 : vector<98x1xf32>
    %103 = arith.mulf %102, %102 : vector<98x1xf32>
    %cst_18 = arith.constant 1.000000e+00 : f32
    %104 = vector.broadcast %cst_18 : f32 to vector<98x1xf32>
    %105 = arith.subf %104, %7 : vector<98x1xf32>
    %106 = arith.mulf %105, %5 : vector<98x1xf32>
    %107 = arith.mulf %105, %7 : vector<98x1xf32>
    %108 = arith.subf %106, %107 : vector<98x1xf32>
    %109 = arith.mulf %108, %108 : vector<98x1xf32>
    %110 = arith.mulf %105, %6 : vector<98x1xf32>
    %111 = arith.mulf %105, %7 : vector<98x1xf32>
    %112 = arith.subf %110, %111 : vector<98x1xf32>
    %113 = arith.mulf %112, %112 : vector<98x1xf32>
    %114 = arith.addf %109, %113 : vector<98x1xf32>
    %c0_19 = arith.constant 0 : index
    %c0_20 = arith.constant 0 : index
    %115 = vector.load %arg3[%c0_19, %c0_20] : memref<1x1xf32, #tpu.memory_space<vmem>>, vector<1x1xf32>
    %cst_21 = arith.constant 5.000000e-01 : f32
    %116 = vector.broadcast %cst_21 : f32 to vector<98x1xf32>
    %117 = arith.mulf %116, %114 : vector<98x1xf32>
    %118 = arith.addf %103, %117 : vector<98x1xf32>
    %119 = vector.shape_cast %118 : vector<98x1xf32> to vector<1x98x1xf32>
    %cst_22 = arith.constant dense<0.000000e+00> : vector<1xf32>
    %120 = vector.multi_reduction <add>, %119, %cst_22 [1, 2] : vector<1x98x1xf32> to vector<1xf32>
    %121 = vector.shape_cast %120 : vector<1xf32> to vector<1x1x1xf32>
    %122 = vector.extract %121[0, 0, 0] : f32 from vector<1x1x1xf32>
    %123 = vector.broadcast %122 : f32 to vector<1x1xf32>
    %124 = arith.addf %115, %123 : vector<1x1xf32>
    %c0_23 = arith.constant 0 : index
    %c0_24 = arith.constant 0 : index
    %125 = vector.load %arg3[%c0_23, %c0_24] : memref<1x1xf32, #tpu.memory_space<vmem>>, vector<1x1xf32>
    tpu.vector_store %arg3[%c0_23, %c0_24], %124 {strides = array<i32>} : memref<1x1xf32, #tpu.memory_space<vmem>>, vector<1x1xf32>,
    %c0_i32_25 = arith.constant 0 : i32
    %126 = arith.cmpi eq, %arg0, %c0_i32_25 : i32
    %127 = arith.extui %126 : i1 to i32
    %c0_i32_26 = arith.constant 0 : i32
    %128 = arith.cmpi ne, %127, %c0_i32_26 : i32
    scf.if %128 {
      %c97 = arith.constant 97 : index
      %c0_27 = arith.constant 0 : index
      %129 = vector.load %arg1[%c97, %c0_27] : memref<98x30xf32, #tpu.memory_space<vmem>>, vector<1x30xf32>
      %c97_28 = arith.constant 97 : index
      %c0_29 = arith.constant 0 : index
      %130 = vector.load %arg2[%c97_28, %c0_29] : memref<98x25xf32, #tpu.memory_space<vmem>>, vector<1x25xf32>
      %131 = vector.extract_strided_slice %129 {offsets = [0, 0], sizes = [1, 1], strides = [1, 1]} : vector<1x30xf32> to vector<1x1xf32>
      %132 = vector.extract_strided_slice %129 {offsets = [0, 1], sizes = [1, 1], strides = [1, 1]} : vector<1x30xf32> to vector<1x1xf32>
      %133 = vector.extract_strided_slice %129 {offsets = [0, 2], sizes = [1, 1], strides = [1, 1]} : vector<1x30xf32> to vector<1x1xf32>
      %134 = vector.extract_strided_slice %129 {offsets = [0, 3], sizes = [1, 1], strides = [1, 1]} : vector<1x30xf32> to vector<1x1xf32>
      %135 = vector.extract_strided_slice %129 {offsets = [0, 5], sizes = [1, 1], strides = [1, 1]} : vector<1x30xf32> to vector<1x1xf32>
      %136 = vector.extract_strided_slice %129 {offsets = [0, 6], sizes = [1, 1], strides = [1, 1]} : vector<1x30xf32> to vector<1x1xf32>
      %137 = vector.extract_strided_slice %129 {offsets = [0, 7], sizes = [1, 1], strides = [1, 1]} : vector<1x30xf32> to vector<1x1xf32>
      %138 = vector.extract_strided_slice %129 {offsets = [0, 8], sizes = [1, 1], strides = [1, 1]} : vector<1x30xf32> to vector<1x1xf32>
      %139 = vector.extract_strided_slice %130 {offsets = [0, 0], sizes = [1, 1], strides = [1, 1]} : vector<1x25xf32> to vector<1x1xf32>
      %140 = vector.extract_strided_slice %130 {offsets = [0, 1], sizes = [1, 1], strides = [1, 1]} : vector<1x25xf32> to vector<1x1xf32>
      %141 = vector.extract_strided_slice %130 {offsets = [0, 2], sizes = [1, 1], strides = [1, 1]} : vector<1x25xf32> to vector<1x1xf32>
      %142 = vector.extract_strided_slice %130 {offsets = [0, 3], sizes = [1, 1], strides = [1, 1]} : vector<1x25xf32> to vector<1x1xf32>
      %143 = vector.extract_strided_slice %129 {offsets = [0, 10], sizes = [1, 20], strides = [1, 1]} : vector<1x30xf32> to vector<1x20xf32>
      %144 = vector.extract_strided_slice %130 {offsets = [0, 5], sizes = [1, 20], strides = [1, 1]} : vector<1x25xf32> to vector<1x20xf32>
      %cst_30 = arith.constant 5.000000e-01 : f32
      %145 = vector.broadcast %cst_30 : f32 to vector<1x1xf32>
      %146 = arith.mulf %133, %145 : vector<1x1xf32>
      %147 = arith.subf %131, %146 : vector<1x1xf32>
      %cst_31 = arith.constant 5.000000e-01 : f32
      %148 = vector.broadcast %cst_31 : f32 to vector<1x1xf32>
      %149 = arith.mulf %134, %148 : vector<1x1xf32>
      %150 = arith.subf %132, %149 : vector<1x1xf32>
      %cst_32 = arith.constant 5.000000e-01 : f32
      %151 = vector.broadcast %cst_32 : f32 to vector<1x1xf32>
      %152 = arith.mulf %133, %151 : vector<1x1xf32>
      %153 = arith.addf %131, %152 : vector<1x1xf32>
      %cst_33 = arith.constant 5.000000e-01 : f32
      %154 = vector.broadcast %cst_33 : f32 to vector<1x1xf32>
      %155 = arith.mulf %134, %154 : vector<1x1xf32>
      %156 = arith.addf %132, %155 : vector<1x1xf32>
      %cst_34 = arith.constant 5.000000e-01 : f32
      %157 = vector.broadcast %cst_34 : f32 to vector<1x1xf32>
      %158 = arith.mulf %141, %157 : vector<1x1xf32>
      %159 = arith.subf %139, %158 : vector<1x1xf32>
      %cst_35 = arith.constant 5.000000e-01 : f32
      %160 = vector.broadcast %cst_35 : f32 to vector<1x1xf32>
      %161 = arith.mulf %142, %160 : vector<1x1xf32>
      %162 = arith.subf %140, %161 : vector<1x1xf32>
      %cst_36 = arith.constant 5.000000e-01 : f32
      %163 = vector.broadcast %cst_36 : f32 to vector<1x1xf32>
      %164 = arith.mulf %141, %163 : vector<1x1xf32>
      %165 = arith.addf %139, %164 : vector<1x1xf32>
      %cst_37 = arith.constant 5.000000e-01 : f32
      %166 = vector.broadcast %cst_37 : f32 to vector<1x1xf32>
      %167 = arith.mulf %142, %166 : vector<1x1xf32>
      %168 = arith.addf %140, %167 : vector<1x1xf32>
      %169 = arith.maximumf %147, %159 : vector<1x1xf32>
      %170 = arith.maximumf %150, %162 : vector<1x1xf32>
      %171 = arith.minimumf %153, %165 : vector<1x1xf32>
      %172 = arith.minimumf %156, %168 : vector<1x1xf32>
      %173 = arith.subf %171, %169 : vector<1x1xf32>
      %cst_38 = arith.constant 0.000000e+00 : f32
      %174 = vector.broadcast %cst_38 : f32 to vector<1x1xf32>
      %175 = arith.maximumf %173, %174 : vector<1x1xf32>
      %176 = arith.subf %172, %170 : vector<1x1xf32>
      %cst_39 = arith.constant 0.000000e+00 : f32
      %177 = vector.broadcast %cst_39 : f32 to vector<1x1xf32>
      %178 = arith.maximumf %176, %177 : vector<1x1xf32>
      %179 = arith.mulf %175, %178 : vector<1x1xf32>
      %180 = arith.subf %153, %147 : vector<1x1xf32>
      %181 = arith.subf %156, %150 : vector<1x1xf32>
      %182 = arith.mulf %180, %181 : vector<1x1xf32>
      %183 = math.absf %182 : vector<1x1xf32>
      %184 = arith.subf %165, %159 : vector<1x1xf32>
      %185 = arith.subf %168, %162 : vector<1x1xf32>
      %186 = arith.mulf %184, %185 : vector<1x1xf32>
      %187 = math.absf %186 : vector<1x1xf32>
      %188 = arith.addf %183, %187 : vector<1x1xf32>
      %189 = arith.subf %188, %179 : vector<1x1xf32>
      %cst_40 = arith.constant 9.99999997E-7 : f32
      %190 = vector.broadcast %cst_40 : f32 to vector<1x1xf32>
      %191 = arith.addf %189, %190 : vector<1x1xf32>
      %192 = arith.divf %179, %191 : vector<1x1xf32>
      %cst_41 = arith.constant 5.000000e-01 : f32
      %193 = vector.broadcast %cst_41 : f32 to vector<1x1xf32>
      %194 = arith.mulf %137, %193 : vector<1x1xf32>
      %195 = arith.subf %135, %194 : vector<1x1xf32>
      %cst_42 = arith.constant 5.000000e-01 : f32
      %196 = vector.broadcast %cst_42 : f32 to vector<1x1xf32>
      %197 = arith.mulf %138, %196 : vector<1x1xf32>
      %198 = arith.subf %136, %197 : vector<1x1xf32>
      %cst_43 = arith.constant 5.000000e-01 : f32
      %199 = vector.broadcast %cst_43 : f32 to vector<1x1xf32>
      %200 = arith.mulf %137, %199 : vector<1x1xf32>
      %201 = arith.addf %135, %200 : vector<1x1xf32>
      %cst_44 = arith.constant 5.000000e-01 : f32
      %202 = vector.broadcast %cst_44 : f32 to vector<1x1xf32>
      %203 = arith.mulf %138, %202 : vector<1x1xf32>
      %204 = arith.addf %136, %203 : vector<1x1xf32>
      %cst_45 = arith.constant 5.000000e-01 : f32
      %205 = vector.broadcast %cst_45 : f32 to vector<1x1xf32>
      %206 = arith.mulf %141, %205 : vector<1x1xf32>
      %207 = arith.subf %139, %206 : vector<1x1xf32>
      %cst_46 = arith.constant 5.000000e-01 : f32
      %208 = vector.broadcast %cst_46 : f32 to vector<1x1xf32>
      %209 = arith.mulf %142, %208 : vector<1x1xf32>
      %210 = arith.subf %140, %209 : vector<1x1xf32>
      %cst_47 = arith.constant 5.000000e-01 : f32
      %211 = vector.broadcast %cst_47 : f32 to vector<1x1xf32>
      %212 = arith.mulf %141, %211 : vector<1x1xf32>
      %213 = arith.addf %139, %212 : vector<1x1xf32>
      %cst_48 = arith.constant 5.000000e-01 : f32
      %214 = vector.broadcast %cst_48 : f32 to vector<1x1xf32>
      %215 = arith.mulf %142, %214 : vector<1x1xf32>
      %216 = arith.addf %140, %215 : vector<1x1xf32>
      %217 = arith.maximumf %195, %207 : vector<1x1xf32>
      %218 = arith.maximumf %198, %210 : vector<1x1xf32>
      %219 = arith.minimumf %201, %213 : vector<1x1xf32>
      %220 = arith.minimumf %204, %216 : vector<1x1xf32>
      %221 = arith.subf %219, %217 : vector<1x1xf32>
      %cst_49 = arith.constant 0.000000e+00 : f32
      %222 = vector.broadcast %cst_49 : f32 to vector<1x1xf32>
      %223 = arith.maximumf %221, %222 : vector<1x1xf32>
      %224 = arith.subf %220, %218 : vector<1x1xf32>
      %cst_50 = arith.constant 0.000000e+00 : f32
      %225 = vector.broadcast %cst_50 : f32 to vector<1x1xf32>
      %226 = arith.maximumf %224, %225 : vector<1x1xf32>
      %227 = arith.mulf %223, %226 : vector<1x1xf32>
      %228 = arith.subf %201, %195 : vector<1x1xf32>
      %229 = arith.subf %204, %198 : vector<1x1xf32>
      %230 = arith.mulf %228, %229 : vector<1x1xf32>
      %231 = math.absf %230 : vector<1x1xf32>
      %232 = arith.subf %213, %207 : vector<1x1xf32>
      %233 = arith.subf %216, %210 : vector<1x1xf32>
      %234 = arith.mulf %232, %233 : vector<1x1xf32>
      %235 = math.absf %234 : vector<1x1xf32>
      %236 = arith.addf %231, %235 : vector<1x1xf32>
      %237 = arith.subf %236, %227 : vector<1x1xf32>
      %cst_51 = arith.constant 9.99999997E-7 : f32
      %238 = vector.broadcast %cst_51 : f32 to vector<1x1xf32>
      %239 = arith.addf %237, %238 : vector<1x1xf32>
      %240 = arith.divf %227, %239 : vector<1x1xf32>
      %241 = arith.cmpf oge, %192, %240 : vector<1x1xf32>
      %242 = arith.select %241, %131, %135 : vector<1x1xi1>, vector<1x1xf32>
      %243 = arith.select %241, %132, %136 : vector<1x1xi1>, vector<1x1xf32>
      %244 = arith.select %241, %133, %137 : vector<1x1xi1>, vector<1x1xf32>
      %245 = arith.select %241, %134, %138 : vector<1x1xi1>, vector<1x1xf32>
      %cst_52 = arith.constant 0.000000e+00 : f32
      %246 = vector.broadcast %cst_52 : f32 to vector<1x1xf32>
      %247 = arith.cmpf oeq, %139, %246 : vector<1x1xf32>
      %cst_53 = arith.constant 0.000000e+00 : f32
      %248 = vector.broadcast %cst_53 : f32 to vector<1x1xf32>
      %249 = arith.cmpf oeq, %140, %248 : vector<1x1xf32>
      %250 = arith.andi %247, %249 : vector<1x1xi1>
      %cst_54 = arith.constant 0.000000e+00 : f32
      %251 = vector.broadcast %cst_54 : f32 to vector<1x1xf32>
      %252 = arith.cmpf oeq, %141, %251 : vector<1x1xf32>
      %253 = arith.andi %250, %252 : vector<1x1xi1>
      %cst_55 = arith.constant 0.000000e+00 : f32
      %254 = vector.broadcast %cst_55 : f32 to vector<1x1xf32>
      %255 = arith.cmpf oeq, %142, %254 : vector<1x1xf32>
      %256 = arith.andi %253, %255 : vector<1x1xi1>
      %cst_56 = arith.constant 0.000000e+00 : f32
      %cst_57 = arith.constant 1.000000e+00 : f32
      %257 = vector.broadcast %cst_56 : f32 to vector<1x1xf32>
      %258 = vector.broadcast %cst_57 : f32 to vector<1x1xf32>
      %259 = arith.select %256, %257, %258 : vector<1x1xi1>, vector<1x1xf32>
      %260 = arith.subf %139, %242 : vector<1x1xf32>
      %261 = arith.mulf %260, %260 : vector<1x1xf32>
      %262 = arith.subf %140, %243 : vector<1x1xf32>
      %263 = arith.mulf %262, %262 : vector<1x1xf32>
      %264 = math.sqrt %141 : vector<1x1xf32>
      %265 = math.sqrt %244 : vector<1x1xf32>
      %266 = arith.subf %264, %265 : vector<1x1xf32>
      %267 = arith.mulf %266, %266 : vector<1x1xf32>
      %268 = math.sqrt %142 : vector<1x1xf32>
      %269 = math.sqrt %245 : vector<1x1xf32>
      %270 = arith.subf %268, %269 : vector<1x1xf32>
      %271 = arith.mulf %270, %270 : vector<1x1xf32>
      %272 = arith.cmpf one, %267, %267 : vector<1x1xf32>
      %cst_58 = arith.constant 0.000000e+00 : f32
      %273 = vector.broadcast %cst_58 : f32 to vector<1x1xf32>
      %274 = arith.select %272, %273, %267 : vector<1x1xi1>, vector<1x1xf32>
      %275 = arith.cmpf one, %271, %271 : vector<1x1xf32>
      %cst_59 = arith.constant 0.000000e+00 : f32
      %276 = vector.broadcast %cst_59 : f32 to vector<1x1xf32>
      %277 = arith.select %275, %276, %271 : vector<1x1xi1>, vector<1x1xf32>
      %278 = arith.addf %261, %263 : vector<1x1xf32>
      %279 = arith.addf %278, %274 : vector<1x1xf32>
      %280 = arith.addf %279, %277 : vector<1x1xf32>
      %281 = arith.mulf %280, %259 : vector<1x1xf32>
      %cst_60 = arith.constant 5.000000e+00 : f32
      %282 = vector.broadcast %cst_60 : f32 to vector<1x1xf32>
      %283 = arith.mulf %281, %282 : vector<1x1xf32>
      %284 = arith.subf %144, %143 : vector<1x20xf32>
      %285 = arith.mulf %284, %284 : vector<1x20xf32>
      %286 = vector.shape_cast %285 : vector<1x20xf32> to vector<1x1x20xf32>
      %cst_61 = arith.constant dense<0.000000e+00> : vector<1xf32>
      %287 = vector.multi_reduction <add>, %286, %cst_61 [1, 2] : vector<1x1x20xf32> to vector<1xf32>
      %288 = vector.shape_cast %287 : vector<1xf32> to vector<1x1x1xf32>
      %289 = vector.extract %288[0, 0, 0] : f32 from vector<1x1x1xf32>
      %290 = vector.broadcast %289 : f32 to vector<1x1xf32>
      %291 = arith.mulf %290, %259 : vector<1x1xf32>
      %c0_62 = arith.constant 0 : index
      %c0_63 = arith.constant 0 : index
      %292 = vector.load %arg3[%c0_62, %c0_63] : memref<1x1xf32, #tpu.memory_space<vmem>>, vector<1x1xf32>
      %cst_64 = arith.constant 5.000000e+00 : f32
      %293 = vector.broadcast %cst_64 : f32 to vector<1x1xf32>
      %294 = arith.mulf %293, %283 : vector<1x1xf32>
      %295 = arith.addf %294, %291 : vector<1x1xf32>
      %296 = arith.addf %292, %295 : vector<1x1xf32>
      %c0_65 = arith.constant 0 : index
      %c0_66 = arith.constant 0 : index
      %297 = vector.load %arg3[%c0_65, %c0_66] : memref<1x1xf32, #tpu.memory_space<vmem>>, vector<1x1xf32>
      tpu.vector_store %arg3[%c0_65, %c0_66], %296 {strides = array<i32>} : memref<1x1xf32, #tpu.memory_space<vmem>>, vector<1x1xf32>,
    } else {
    }
    return
  }
  func.func @transform_0(%arg0: i32) -> (i32, i32) {
    %c0_i32 = arith.constant 0 : i32
    %c0_i32_0 = arith.constant 0 : i32
    return %arg0, %c0_i32 : i32, i32
  }
  func.func @transform_1(%arg0: i32) -> (i32, i32) {
    %c0_i32 = arith.constant 0 : i32
    %c0_i32_0 = arith.constant 0 : i32
    return %arg0, %c0_i32 : i32, i32
  }
  func.func @transform_2(%arg0: i32) -> (i32, i32) {
    %c0_i32 = arith.constant 0 : i32
    %c0_i32_0 = arith.constant 0 : i32
    %c0_i32_1 = arith.constant 0 : i32
    return %c0_i32, %c0_i32_0 : i32, i32
  }
}

</mosaic_0001>

<bundles_post_ra>
// kernel: yolo_loss.1
= control target key start
LH: loop header
LB: loop body
LE: loop exit
PB: predicated region body
PF: predicated region fallthrough
CT: control target
= control target key end

     0   :  { %s2173_s17 = smov 126   ;;  %s4005_s0 = inlined_call_operand.vmem [shape: f32[98,30], index: 0, kind: input, shape index: {}]   ;;  %s4006_s1 = inlined_call_operand.vmem [shape: f32[98,25], index: 1, kind: input, shape index: {}]   ;;  %s4007_s2 = inlined_call_operand.hbm [shape: f32[1,1], index: 2, kind: output, shape index: {}]  }
   0x1   :  { %v2209_v0 = vld [vmem:[%s4005_s0 + $0x10] sm:$0xff]  ;;  %v2214_v1 = vld [vmem:[%s4005_s0] sm:$0xff]  ;;  %v2219_v2 = vld [vmem:[%s4005_s0 + $0x18] sm:$0xff] }
   0x2   :  { %v46_v3 = vmul.f32 0.5, %v2209_v0  ;;  %v44_v4 = vmul.f32 0.5, %v2214_v1  ;;  %v2226_v5 = vld [vmem:[%s4005_s0 + $0x8] sm:$0xff]  ;;  %v47_v6 = vmul.f32 0.5, %v2219_v2  ;;  %v2240_v9 = vld [vmem:[%s4005_s0 + $0x20] sm:$0xff]  ;;  %v2249_v12 = vld [vmem:[%s4005_s0 + $0x38] sm:$0xff] }
   0x3   :  { %v45_v7 = vmul.f32 0.5, %v2226_v5  ;;  %v2235_v8 = vld [vmem:[%s4005_s0 + $0x28] sm:$0xff]  ;;  %v48_v11 = vmul.f32 0.5, %v2240_v9  ;;  %4111 = vst [vmem:[#allocation6_spill] sm:$0xff] %v2249_v12  ;;  %v2254_v13 = vld [vmem:[%s4005_s0 + $0x30] sm:$0xff] }
   0x4   :  { %74 = vrot.lane.b32.xlu1 %v46_v3, %s2173_s17  ;;  %70 = vrot.lane.b32.xlu0 %v44_v4, %s2173_s17  ;;  %4110 = vst [vmem:[#allocation5_spill] sm:$0xff] %v2235_v8  ;;  %v49_v10 = vmul.f32 0.5, %v2235_v8  ;;  %4112 = vst [vmem:[#allocation7_spill] sm:$0xff] %v2254_v13 }
   0x8   :  { %76 = vrot.lane.b32.xlu1 %v47_v6, %s2173_s17  ;;  %72 = vrot.lane.b32.xlu0 %v45_v7, %s2173_s17 }
   0x9   :  { %7 = vsyncpa [#allocation3], 0  ;;  %v51_v14 = vmul.f32 0.5, %v2249_v12  ;;  %v50_v15 = vmul.f32 0.5, %v2254_v13  ;;  %v2263_v16 = vld [vmem:[%s4005_s0 + $0x48] sm:$0xff]  ;;  %v2268_v17 = vld [vmem:[%s4005_s0 + $0x40] sm:$0xff] }
   0xa   :  { %4113 = vst [vmem:[#allocation8_spill] sm:$0xff] %v2263_v16  ;;  %4114 = vst [vmem:[#allocation9_spill] sm:$0xff] %v2268_v17  ;;  %v53_v18 = vmul.f32 0.5, %v2263_v16  ;;  %v52_v19 = vmul.f32 0.5, %v2268_v17  ;;  %v2277_v20 = vld [vmem:[%s4005_s0 + $0x58] sm:$0xff]  ;;  %v2282_v21 = vld [vmem:[%s4005_s0 + $0x50] sm:$0xff] }
   0xb   :  { %4115 = vst [vmem:[#allocation10_spill] sm:$0xff] %v2277_v20  ;;  %4116 = vst [vmem:[#allocation11_spill] sm:$0xff] %v2282_v21  ;;  %v55_v22 = vmul.f32 0.5, %v2277_v20  ;;  %v54_v23 = vmul.f32 0.5, %v2282_v21  ;;  %v2291_v24 = vld [vmem:[%s4006_s1] sm:$0xff]  ;;  %v2305_v28 = vld [vmem:[%s4006_s1 + $0x10] sm:$0xff] }
   0xc   :  { %80 = vrot.lane.b32.xlu1 %v49_v10, %s2173_s17  ;;  %78 = vrot.lane.b32.xlu0 %v48_v11, %s2173_s17  ;;  %v2296_v25 = vld [vmem:[%s4005_s0 + $0x60] sm:$0x3]  ;;  %v135_v26 = vmul.f32 0.5, %v2291_v24  ;;  %v2310_v29 = vld [vmem:[%s4006_s1 + $0x8] sm:$0xff]  ;;  %v137_v30 = vmul.f32 0.5, %v2305_v28  ;;  %s2174_s7 = smov 5  }
   0xd   :  { %4117 = vst [vmem:[#allocation12_spill] sm:$0xff] %v2296_v25  ;;  %v56_v27 = vmul.f32 0.5, %v2296_v25  ;;  %v136_v31 = vmul.f32 0.5, %v2310_v29  ;;  %v2319_v32 = vld [vmem:[%s4006_s1 + $0x20] sm:$0xff]  ;;  %v2324_v33 = vld [vmem:[%s4006_s1 + $0x18] sm:$0xff]  ;;  %v2333_v36 = vld [vmem:[%s4006_s1 + $0x30] sm:$0xff] }
   0xe   :  { %v139_v34 = vmul.f32 0.5, %v2319_v32  ;;  %v138_v35 = vmul.f32 0.5, %v2324_v33  ;;  %v2338_v37 = vld [vmem:[%s4006_s1 + $0x28] sm:$0xff]  ;;  %v141_v38 = vmul.f32 0.5, %v2333_v36  ;;  %v2347_v40 = vld [vmem:[%s4006_s1 + $0x40] sm:$0xff]  ;;  %v2352_v41 = vld [vmem:[%s4006_s1 + $0x38] sm:$0xff] }
   0xf   :  { %v140_v39 = vmul.f32 0.5, %v2338_v37  ;;  %4118 = vst [vmem:[#allocation13_spill] sm:$0xff] %v2347_v40  ;;  %4119 = vst [vmem:[#allocation14_spill] sm:$0xff] %v2352_v41  ;;  %v143_v42 = vmul.f32 0.5, %v2347_v40  ;;  %v142_v43 = vmul.f32 0.5, %v2352_v41  ;;  %v2361_v44 = vld [vmem:[%s4006_s1 + $0x50] sm:$0xff] }
  0x10   :  { %84 = vrot.lane.b32.xlu1 %v51_v14, %s2173_s17  ;;  %82 = vrot.lane.b32.xlu0 %v50_v15, %s2173_s17  ;;  %v2366_v45 = vld [vmem:[%s4006_s1 + $0x48] sm:$0xff]  ;;  %v145_v46 = vmul.f32 0.5, %v2361_v44  ;;  %v2375_v48 = vld [vmem:[%s4006_s1 + $0x60] sm:$0x3]  ;;  %s2175_s8 = smov 2   ;;  %s2176_s9 = smov 127  }
  0x11   :  { %v144_v47 = vmul.f32 0.5, %v2366_v45  ;;  %v2380_v49 = vld [vmem:[%s4006_s1 + $0x58] sm:$0xff]  ;;  %v147_v50 = vmul.f32 0.5, %v2375_v48  ;;  %s2177_s21 = smov 7   ;;  %s2178_s24 = smov 3   ;;  %vm1988_vm14 = vcmask 155648  }
  0x12   :  { %v146_v51 = vmul.f32 0.5, %v2380_v49  ;;  %s2179_s27 = smov 8   ;;  %s2180_s20 = smov 123  }
  0x13   :  { %s2183_s4 = smov 108   ;;  %s2184_s13 = smov 121  }
  0x14   :  { %88 = vrot.lane.b32.xlu1 %v53_v18, %s2173_s17  ;;  %86 = vrot.lane.b32.xlu0 %v52_v19, %s2173_s17  ;;  %s2185_s15 = smov 125  }
  0x18   :  { %92 = vrot.lane.b32.xlu1 %v55_v22, %s2173_s17  ;;  %90 = vrot.lane.b32.xlu0 %v54_v23, %s2173_s17 }
  0x1c   :  { %161 = vrot.lane.b32.xlu1 %v135_v26, %s2173_s17  ;;  %94 = vrot.lane.b32.xlu0 %v56_v27, %s2173_s17 }
  0x20   :  { %165 = vrot.lane.b32.xlu1 %v137_v30, %s2173_s17  ;;  %163 = vrot.lane.b32.xlu0 %v136_v31, %s2173_s17 }
  0x24   :  { %169 = vrot.lane.b32.xlu1 %v139_v34, %s2173_s17  ;;  %167 = vrot.lane.b32.xlu0 %v138_v35, %s2173_s17 }
  0x28   :  { %173 = vrot.lane.b32.xlu1 %v141_v38, %s2173_s17  ;;  %171 = vrot.lane.b32.xlu0 %v140_v39, %s2173_s17 }
  0x2c   :  { %177 = vrot.lane.b32.xlu1 %v143_v42, %s2173_s17  ;;  %175 = vrot.lane.b32.xlu0 %v142_v43, %s2173_s17 }
  0x30   :  { %181 = vrot.lane.b32.xlu1 %v145_v46, %s2173_s17  ;;  %179 = vrot.lane.b32.xlu0 %v144_v47, %s2173_s17 }
  0x34   :  { %185 = vrot.lane.b32.xlu1 %v147_v50, %s2173_s17  ;;  %183 = vrot.lane.b32.xlu0 %v146_v51, %s2173_s17 }
  0x38   :  { %603 = vrot.lane.b32.xlu1 %v2291_v24, %s2174_s7  ;;  %605 = vrot.lane.b32.xlu0 %v2310_v29, %s2174_s7 }
  0x3c   :  { %954 = vrot.lane.b32.xlu1 %v2291_v24, %s2175_s8  ;;  %956 = vrot.lane.b32.xlu0 %v2310_v29, %s2175_s8 }
  0x40   :  { %607 = vrot.lane.b32.xlu1 %v2305_v28, %s2174_s7  ;;  %958 = vrot.lane.b32.xlu0 %v2305_v28, %s2175_s8 }
  0x44   :  { %609 = vrot.lane.b32.xlu1 %v2324_v33, %s2174_s7  ;;  %960 = vrot.lane.b32.xlu0 %v2324_v33, %s2175_s8 }
  0x48   :  { %611 = vrot.lane.b32.xlu1 %v2319_v32, %s2174_s7  ;;  %962 = vrot.lane.b32.xlu0 %v2319_v32, %s2175_s8 }
  0x4c   :  { %613 = vrot.lane.b32.xlu1 %v2338_v37, %s2174_s7  ;;  %964 = vrot.lane.b32.xlu0 %v2338_v37, %s2175_s8 }
  0x50   :  { %615 = vrot.lane.b32.xlu1 %v2333_v36, %s2174_s7  ;;  %966 = vrot.lane.b32.xlu0 %v2333_v36, %s2175_s8 }
  0x54   :  { %617 = vrot.lane.b32.xlu1 %v2352_v41, %s2174_s7  ;;  %968 = vrot.lane.b32.xlu0 %v2352_v41, %s2175_s8 }
  0x58   :  { %619 = vrot.lane.b32.xlu1 %v2347_v40, %s2174_s7  ;;  %970 = vrot.lane.b32.xlu0 %v2347_v40, %s2175_s8 }
  0x5c   :  { %621 = vrot.lane.b32.xlu1 %v2366_v45, %s2174_s7  ;;  %972 = vrot.lane.b32.xlu0 %v2366_v45, %s2175_s8 }
  0x60   :  { %623 = vrot.lane.b32.xlu1 %v2361_v44, %s2174_s7 }
  0x76   :  { %v75_v52 = vpop.permute.xlu1 %74  ;;  %v71_v53 = vpop.permute.xlu0 %70 }
  0x77   :  { %v109_v54 = vsub.f32 %v2214_v1, %v71_v53  ;;  %v122_v55 = vadd.f32 %v71_v53, %v2214_v1  ;;  %v2433_v56 = vsub.f32 %v2209_v0, %v75_v52  ;;  %v2436_v57 = vadd.f32 %v75_v52, %v2209_v0 }
  0x79   :  { %v2438_v58 = vsub.f32 %v122_v55, %v109_v54  ;;  %v2450_v63 = vsub.f32 %v2436_v57, %v2433_v56 }
  0x7a   :  { %v77_v59 = vpop.permute.xlu1 %76  ;;  %v73_v60 = vpop.permute.xlu0 %72 }
  0x7b   :  { %4120 = vst [vmem:[#allocation15_spill] sm:$0xff] %v2438_v58  ;;  %v2441_v61 = vsub.f32 %v2226_v5, %v73_v60  ;;  %v2444_v62 = vadd.f32 %v73_v60, %v2226_v5  ;;  %369 = vrot.lane.b32.xlu1 %v2438_v58, %s2176_s9  ;;  %4121 = vst [vmem:[#allocation16_spill] sm:$0xff] %v2450_v63  ;;  %v2457_v4 = vsub.f32 %v2219_v2, %v77_v59 }
  0x7c   :  { %v2460_v6 = vadd.f32 %v77_v59, %v2219_v2 }
  0x7d   :  { %v2454_v3 = vsub.f32 %v2444_v62, %v2441_v61 }
  0x7e   :  { %v81_v7 = vpop.permute.xlu1 %80  ;;  %v79_v10 = vpop.permute.xlu0 %78  ;;  %v2468_v15 = vsub.f32 %v2460_v6, %v2457_v4 }
  0x7f   :  { %4122 = vst [vmem:[#allocation17_spill] sm:$0xff] %v2454_v3  ;;  %373 = vrot.lane.b32.xlu1 %v2450_v63, %s2176_s9  ;;  %371 = vrot.lane.b32.xlu0 %v2454_v3, %s2176_s9 }
  0x80   :  { %4123 = vst [vmem:[#allocation18_spill] sm:$0xff] %v2468_v15 }
  0x82   :  { %v85_v11 = vpop.permute.xlu1 %84  ;;  %v83_v14 = vpop.permute.xlu0 %82 }
  0x83   :  { %v2471_v18 = vsub.f32 %v2249_v12, %v85_v11  ;;  %v2474_v19 = vadd.f32 %v85_v11, %v2249_v12  ;;  %375 = vrot.lane.b32.xlu0 %v2468_v15, %s2176_s9 }
  0x85   :  { %v2480_v22 = vsub.f32 %v2474_v19, %v2471_v18 }
  0x86   :  { %v89_v23 = vpop.permute.xlu1 %88  ;;  %v87_v26 = vpop.permute.xlu0 %86 }
  0x87   :  { %4124 = vst [vmem:[#allocation19_spill] sm:$0xff] %v2480_v22  ;;  %v2483_v27 = vsub.f32 %v2263_v16, %v89_v23  ;;  %v2486_v30 = vadd.f32 %v89_v23, %v2263_v16  ;;  %v2489_v31 = vsub.f32 %v2268_v17, %v87_v26  ;;  %v2492_v34 = vadd.f32 %v87_v26, %v2268_v17 }
  0x88   :  { %v2583_v16 = vadd.f32 %v83_v14, %v2254_v13 }
  0x89   :  { %v2496_v35 = vsub.f32 %v2486_v30, %v2483_v27  ;;  %v2500_v38 = vsub.f32 %v2492_v34, %v2489_v31 }
  0x8a   :  { %v93_v39 = vpop.permute.xlu1 %92  ;;  %v91_v42 = vpop.permute.xlu0 %90 }
  0x8b   :  { %4125 = vst [vmem:[#allocation20_spill] sm:$0xff] %v2496_v35  ;;  %4126 = vst [vmem:[#allocation21_spill] sm:$0xff] %v2500_v38  ;;  %v2503_v43 = vsub.f32 %v2277_v20, %v93_v39  ;;  %v2506_v46 = vadd.f32 %v93_v39, %v2277_v20  ;;  %v2509_v47 = vsub.f32 %v2282_v21, %v91_v42 }
  0x8c   :  { %v2512_v50 = vadd.f32 %v91_v42, %v2282_v21 }
  0x8d   :  { %v2516_v51 = vsub.f32 %v2506_v46, %v2503_v43 }
  0x8e   :  { %v2520_v52 = vsub.f32 %v2512_v50, %v2509_v47  ;;  %v162_v53 = vpop.permute.xlu1 %161  ;;  %v95_v59 = vpop.permute.xlu0 %94 }
  0x8f   :  { %4127 = vst [vmem:[#allocation22_spill] sm:$0xff] %v2516_v51  ;;  %v2523_v60 = vsub.f32 %v2291_v24, %v162_v53  ;;  %v2526_v11 = vadd.f32 %v162_v53, %v2291_v24  ;;  %v2529_v23 = vsub.f32 %v2296_v25, %v95_v59  ;;  %v2532_v26 = vadd.f32 %v95_v59, %v2296_v25 }
  0x90   :  { %4128 = vst [vmem:[#allocation23_spill] sm:$0xff] %v2520_v52  ;;  %v2569_v52 = vsub.f32 %v2240_v9, %v79_v10 }
  0x91   :  { %v226_v39 = vmax.f32 %v109_v54, %v2523_v60  ;;  %v239_v42 = vmin.f32 %v122_v55, %v2526_v11  ;;  %v2538_v15 = vsub.f32 %v2532_v26, %v2529_v23  ;;  %v2553_v54 = vsub.f32 %v2235_v8, %v81_v7 }
  0x92   :  { %v166_v63 = vpop.permute.xlu1 %165  ;;  %v164_v58 = vpop.permute.xlu0 %163 }
  0x93   :  { %4129 = vst [vmem:[#allocation24_spill] sm:$0xff] %v2538_v15  ;;  %v2541_v3 = vsub.f32 %v2305_v28, %v166_v63  ;;  %v2544_v53 = vadd.f32 %v166_v63, %v2305_v28  ;;  %v2547_v51 = vsub.f32 %v2310_v29, %v164_v58  ;;  %v2550_v59 = vadd.f32 %v164_v58, %v2310_v29 }
  0x94   :  { %v2555_v55 = vsub.f32 %v239_v42, %v226_v39  ;;  %v2566_v58 = vadd.f32 %v81_v7, %v2235_v8  ;;  %v2572_v39 = vadd.f32 %v79_v10, %v2240_v9  ;;  %v2580_v7 = vsub.f32 %v2254_v13, %v83_v14 }
  0x95   :  { %v228_v15 = vmax.f32 %v2433_v56, %v2541_v3  ;;  %v241_v25 = vmin.f32 %v2436_v57, %v2544_v53  ;;  %v227_v63 = vmax.f32 %v2441_v61, %v2547_v51  ;;  %v240_v20 = vmin.f32 %v2444_v62, %v2550_v59 }
  0x96   :  { %4130 = vst [vmem:[#allocation25_spill] sm:$0xff] %v2555_v55  ;;  %v170_v42 = vpop.permute.xlu1 %169  ;;  %v168_v56 = vpop.permute.xlu0 %167  ;;  %v4035_v21 = vmax.f32 %v2555_v55, 0.0 }
  0x97   :  { %v204_v57 = vsub.f32 %v2319_v32, %v170_v42  ;;  %v217_v61 = vadd.f32 %v170_v42, %v2319_v32  ;;  %v203_v35 = vsub.f32 %v2324_v33, %v168_v56  ;;  %v216_v62 = vadd.f32 %v168_v56, %v2324_v33 }
  0x98   :  { %291 = vrot.lane.b32.xlu0 %v4035_v21, %s2176_s9  ;;  %v2588_v10 = vsub.f32 %v241_v25, %v228_v15  ;;  %v2590_v38 = vsub.f32 %v240_v20, %v227_v63 }
  0x99   :  { %v230_v42 = vmax.f32 %v2569_v52, %v204_v57  ;;  %v243_v17 = vmin.f32 %v2572_v39, %v217_v61  ;;  %v229_v56 = vmax.f32 %v2457_v4, %v203_v35  ;;  %v242_v22 = vmin.f32 %v2460_v6, %v216_v62 }
  0x9a   :  { %4131 = vst [vmem:[#allocation26_spill] sm:$0xff] %v2588_v10  ;;  %4132 = vst [vmem:[#allocation27_spill] sm:$0xff] %v2590_v38  ;;  %v174_v12 = vpop.permute.xlu1 %173  ;;  %v172_v8 = vpop.permute.xlu0 %171  ;;  %v4036_v14 = vmax.f32 %v2588_v10, 0.0  ;;  %v4039_v13 = vmax.f32 %v2590_v38, 0.0  ;;  %v2598_v55 = vsub.f32 %v216_v62, %v203_v35  ;;  %v2600_v25 = vsub.f32 %v217_v61, %v204_v57 }
  0x9b   :  { %v206_v20 = vsub.f32 %v2333_v36, %v174_v12  ;;  %v219_v15 = vadd.f32 %v174_v12, %v2333_v36  ;;  %v205_v63 = vsub.f32 %v2338_v37, %v172_v8  ;;  %v218_v4 = vadd.f32 %v172_v8, %v2338_v37 }
  0x9c   :  { %295 = vrot.lane.b32.xlu0 %v4036_v14, %s2176_s9  ;;  %293 = vrot.lane.b32.xlu1 %v4039_v13, %s2176_s9  ;;  %v2612_v6 = vsub.f32 %v243_v17, %v230_v42  ;;  %v2614_v35 = vsub.f32 %v242_v22, %v229_v56 }
  0x9d   :  { %v232_v57 = vmax.f32 %v2580_v7, %v206_v20  ;;  %v245_v12 = vmin.f32 %v2583_v16, %v219_v15  ;;  %v231_v61 = vmax.f32 %v2553_v54, %v205_v63  ;;  %v244_v8 = vmin.f32 %v2566_v58, %v218_v4 }
  0x9e   :  { %4133 = vst [vmem:[#allocation28_spill] sm:$0xff] %v2612_v6  ;;  %v178_v62 = vpop.permute.xlu1 %177  ;;  %v176_v21 = vpop.permute.xlu0 %175  ;;  %v4042_v14 = vmax.f32 %v2612_v6, 0.0  ;;  %v4044_v10 = vmax.f32 %v2614_v35, 0.0  ;;  %v2622_v38 = vsub.f32 %v218_v4, %v205_v63  ;;  %v2624_v17 = vsub.f32 %v219_v15, %v206_v20 }
  0x9f   :  { %v208_v22 = vsub.f32 %v2347_v40, %v178_v62  ;;  %v221_v42 = vadd.f32 %v178_v62, %v2347_v40  ;;  %v207_v56 = vsub.f32 %v2352_v41, %v176_v21  ;;  %v220_v13 = vadd.f32 %v176_v21, %v2352_v41 }
  0xa0   :  { %4134 = vst [vmem:[#allocation29_spill] sm:$0xff] %v2624_v17  ;;  %299 = vrot.lane.b32.xlu0 %v4042_v14, %s2176_s9  ;;  %297 = vrot.lane.b32.xlu1 %v4044_v10, %s2176_s9  ;;  %v2636_v63 = vsub.f32 %v245_v12, %v232_v57  ;;  %v2638_v20 = vsub.f32 %v244_v8, %v231_v61 }
  0xa1   :  { %v234_v15 = vmax.f32 %v2489_v31, %v208_v22  ;;  %v247_v4 = vmin.f32 %v2492_v34, %v221_v42  ;;  %v2642_v62 = vsub.f32 %v221_v42, %v208_v22  ;;  %v233_v21 = vmax.f32 %v2471_v18, %v207_v56 }
  0xa2   :  { %4135 = vst [vmem:[#allocation30_spill] sm:$0xff] %v2636_v63  ;;  %4136 = vst [vmem:[#allocation31_spill] sm:$0xff] %v2638_v20  ;;  %v246_v40 = vmin.f32 %v2474_v19, %v220_v13  ;;  %v2646_v6 = vsub.f32 %v220_v13, %v207_v56  ;;  %v182_v14 = vpop.permute.xlu1 %181  ;;  %v180_v41 = vpop.permute.xlu0 %179  ;;  %v4045_v10 = vmax.f32 %v2636_v63, 0.0  ;;  %v4046_v57 = vmax.f32 %v2638_v20, 0.0 }
  0xa3   :  { %4137 = vst [vmem:[#allocation32_spill] sm:$0xff] %v2642_v62  ;;  %v210_v12 = vsub.f32 %v2361_v44, %v182_v14  ;;  %v223_v31 = vadd.f32 %v182_v14, %v2361_v44  ;;  %v209_v34 = vsub.f32 %v2366_v45, %v180_v41  ;;  %v222_v61 = vadd.f32 %v180_v41, %v2366_v45 }
  0xa4   :  { %4138 = vst [vmem:[#allocation33_spill] sm:$0xff] %v2646_v6  ;;  %303 = vrot.lane.b32.xlu0 %v4045_v10, %s2176_s9  ;;  %301 = vrot.lane.b32.xlu1 %v4046_v57, %s2176_s9  ;;  %v2660_v13 = vsub.f32 %v247_v4, %v234_v15  ;;  %v2662_v18 = vsub.f32 %v246_v40, %v233_v21 }
  0xa5   :  { %v236_v19 = vmax.f32 %v2509_v47, %v210_v12  ;;  %v249_v14 = vmin.f32 %v2512_v50, %v223_v31  ;;  %v2666_v8 = vsub.f32 %v223_v31, %v210_v12  ;;  %v235_v41 = vmax.f32 %v2483_v27, %v209_v34 }
  0xa6   :  { %4139 = vst [vmem:[#allocation34_spill] sm:$0xff] %v2660_v13  ;;  %4140 = vst [vmem:[#allocation35_spill] sm:$0xff] %v2662_v18  ;;  %v248_v22 = vmin.f32 %v2486_v30, %v222_v61  ;;  %v2670_v42 = vsub.f32 %v222_v61, %v209_v34  ;;  %v186_v56 = vpop.permute.xlu1 %185  ;;  %v184_v10 = vpop.permute.xlu0 %183  ;;  %v4047_v57 = vmax.f32 %v2660_v13, 0.0  ;;  %v4052_v15 = vmax.f32 %v2662_v18, 0.0  ;;  %v4158_v13 = vld [vmem:[#allocation13_spill] sm:$0xff] }
  0xa7   :  { %4141 = vst [vmem:[#allocation36_spill] sm:$0xff] %v2666_v8  ;;  %v212_v40 = vsub.f32 %v2375_v48, %v186_v56  ;;  %v225_v47 = vadd.f32 %v186_v56, %v2375_v48  ;;  %v211_v50 = vsub.f32 %v2380_v49, %v184_v10  ;;  %v224_v4 = vadd.f32 %v184_v10, %v2380_v49 }
  0xa8   :  { %4142 = vst [vmem:[#allocation37_spill] sm:$0xff] %v2670_v42  ;;  %307 = vrot.lane.b32.xlu0 %v4047_v57, %s2176_s9  ;;  %305 = vrot.lane.b32.xlu1 %v4052_v15, %s2176_s9  ;;  %v2684_v27 = vsub.f32 %v249_v14, %v236_v19  ;;  %v2686_v30 = vsub.f32 %v248_v22, %v235_v41 }
  0xa9   :  { %v238_v21 = vmax.f32 %v2529_v23, %v212_v40  ;;  %v251_v12 = vmin.f32 %v2532_v26, %v225_v47  ;;  %v2690_v31 = vsub.f32 %v225_v47, %v212_v40  ;;  %v237_v10 = vmax.f32 %v2503_v43, %v211_v50 }
  0xaa   :  { %4143 = vst [vmem:[#allocation38_spill] sm:$0xff] %v2684_v27  ;;  %4144 = vst [vmem:[#allocation39_spill] sm:$0xff] %v2686_v30  ;;  %v250_v34 = vmin.f32 %v2506_v46, %v224_v4  ;;  %v2694_v61 = vsub.f32 %v224_v4, %v211_v50  ;;  %v4050_v56 = vmax.f32 %v2684_v27, 0.0  ;;  %v4051_v57 = vmax.f32 %v2686_v30, 0.0  ;;  %v4156_v27 = vld [vmem:[#allocation21_spill] sm:$0xff]  ;;  %v4157_v30 = vld [vmem:[#allocation8_spill] sm:$0xff] }
  0xab   :  { %4145 = vst [vmem:[#allocation40_spill] sm:$0xff] %v2690_v31  ;;  %v2698_v19 = vsub.f32 %v251_v12, %v238_v21  ;;  %v2726_v26 = vsub.f32 %v2572_v39, %v2569_v52  ;;  %v2734_v14 = vsub.f32 %v2566_v58, %v2553_v54  ;;  %v2738_v41 = vsub.f32 %v2583_v16, %v2580_v7  ;;  %v2744_v52 = vpop.permute.xlu1 %603  ;;  %v2750_v54 = vpop.permute.xlu0 %605 }
  0xac   :  { %4146 = vst [vmem:[#allocation41_spill] sm:$0xff] %v2694_v61  ;;  %311 = vrot.lane.b32.xlu0 %v4050_v56, %s2176_s9  ;;  %309 = vrot.lane.b32.xlu1 %v4051_v57, %s2176_s9  ;;  %v2706_v23 = vsub.f32 %v250_v34, %v237_v10  ;;  %v2754_v16 = vsub.f32 %v2526_v11, %v2523_v60  ;;  %v4153_v56 = vld [vmem:[#allocation19_spill] sm:$0xff] }
  0xad   :  { %4147 = vst [vmem:[#allocation42_spill] sm:$0xff] %v2698_v19  ;;  %v4048_v43 = vmax.f32 %v2698_v19, 0.0  ;;  %4149 = vst [vmem:[#allocation44_spill] sm:$0xff] %v2738_v41  ;;  %v2758_v58 = vsub.f32 %v2550_v59, %v2547_v51  ;;  %v642_v39 = vmax.f32 %v2214_v1, %v2744_v52  ;;  %v643_v22 = vmax.f32 %v2226_v5, %v2750_v54  ;;  %v4155_v19 = vld [vmem:[#allocation9_spill] sm:$0xff] }
  0xae   :  { %4148 = vst [vmem:[#allocation43_spill] sm:$0xff] %v2706_v23  ;;  %v4049_v46 = vmax.f32 %v2706_v23, 0.0 }
  0xaf   :  { %v955_v7 = vpop.permute.xlu1 %954  ;;  %v957_v40 = vpop.permute.xlu0 %956 }
  0xb0   :  { %315 = vrot.lane.b32.xlu0 %v4048_v43, %s2176_s9  ;;  %313 = vrot.lane.b32.xlu1 %v4049_v46, %s2176_s9  ;;  %v2769_v60 = vsub.f32 %v2291_v24, %v955_v7  ;;  %v2776_v11 = vsub.f32 %v2310_v29, %v957_v40  ;;  %v2784_v24 = vsub.f32 %v2544_v53, %v2541_v3  ;;  %v4152_v46 = vld [vmem:[#allocation6_spill] sm:$0xff] }
  0xb3   :  { %v2773_v51 = vpop.permute.xlu1 %607  ;;  %v959_v59 = vpop.permute.xlu0 %958 }
  0xb4   :  { %974 = vrot.lane.b32.xlu0 %v2361_v44, %s2175_s8  ;;  %625 = vrot.lane.b32.xlu1 %v2380_v49, %s2174_s7  ;;  %v644_v47 = vmax.f32 %v2209_v0, %v2773_v51  ;;  %v2795_v4 = vsub.f32 %v2305_v28, %v959_v59 }
  0xb7   :  { %v2788_v50 = vpop.permute.xlu1 %609  ;;  %v961_v29 = vpop.permute.xlu0 %960 }
  0xb8   :  { %976 = vrot.lane.b32.xlu0 %v2380_v49, %s2175_s8  ;;  %627 = vrot.lane.b32.xlu1 %v2375_v48, %s2174_s7  ;;  %v645_v53 = vmax.f32 %v2219_v2, %v2788_v50  ;;  %v2811_v28 = vsub.f32 %v2324_v33, %v961_v29 }
  0xbb   :  { %v2800_v3 = vpop.permute.xlu1 %611  ;;  %v963_v21 = vpop.permute.xlu0 %962 }
  0xbc   :  { %978 = vrot.lane.b32.xlu0 %v2375_v48, %s2175_s8  ;;  %377 = vrot.lane.b32.xlu1 %v2726_v26, %s2176_s9  ;;  %v646_v34 = vmax.f32 %v2240_v9, %v2800_v3  ;;  %v2825_v33 = vsub.f32 %v2319_v32, %v963_v21  ;;  %v4151_v32 = vld [vmem:[#allocation7_spill] sm:$0xff] }
  0xbf   :  { %v2808_v12 = vpop.permute.xlu1 %613  ;;  %v965_v10 = vpop.permute.xlu0 %964 }
  0xc0   :  { %379 = vrot.lane.b32.xlu0 %v2734_v14, %s2176_s9  ;;  %381 = vrot.lane.b32.xlu1 %v2738_v41, %s2176_s9  ;;  %v2842_v29 = vsub.f32 %v2338_v37, %v965_v10  ;;  %v4163_v41 = vld [vmem:[#allocation11_spill] sm:$0xff] }
  0xc3   :  { %v967_v7 = vpop.permute.xlu0 %966 }
  0xc4   :  { %824 = vrot.lane.b32.xlu0 %v2214_v1, %s2175_s8  ;;  %826 = vrot.lane.b32.xlu1 %v2226_v5, %s2175_s8  ;;  %v2858_v37 = vsub.f32 %v2333_v36, %v967_v7  ;;  %v4154_v36 = vld [vmem:[#allocation14_spill] sm:$0xff] }
  0xc8   :  { %460 = vrot.lane.b32.xlu0 %v2754_v16, %s2176_s9  ;;  %462 = vrot.lane.b32.xlu1 %v2758_v58, %s2176_s9 }
  0xcc   :  { %681 = vrot.lane.b32.xlu0 %v642_v39, %s2175_s8  ;;  %683 = vrot.lane.b32.xlu1 %v643_v22, %s2175_s8  ;;  %v2822_v39 = vpop.permute.xlu1 %615  ;;  %v4150_v22 = vld [vmem:[#allocation5_spill] sm:$0xff] }
  0xcd   :  { %v647_v40 = vmax.f32 %v4150_v22, %v2808_v12  ;;  %v648_v21 = vmax.f32 %v4151_v32, %v2822_v39 }
  0xd0   :  { %828 = vrot.lane.b32.xlu0 %v2209_v0, %s2175_s8  ;;  %1019 = vrot.lane.b32.xlu1 %v2769_v60, %s2176_s9  ;;  %v2832_v59 = vpop.permute.xlu1 %617 }
  0xd4   :  { %464 = vrot.lane.b32.xlu1 %v2784_v24, %s2176_s9  ;;  %1021 = vrot.lane.b32.xlu0 %v2776_v11, %s2176_s9 }
  0xd8   :  { %830 = vrot.lane.b32.xlu1 %v2219_v2, %s2175_s8  ;;  %685 = vrot.lane.b32.xlu0 %v644_v47, %s2175_s8  ;;  %v969_v47 = vpop.permute.xlu0 %968 }
  0xd9   :  { %v2874_v7 = vsub.f32 %v4154_v36, %v969_v47 }
  0xdc   :  { %466 = vrot.lane.b32.xlu1 %v2598_v55, %s2176_s9  ;;  %1023 = vrot.lane.b32.xlu0 %v2795_v4, %s2176_s9 }
  0xe0   :  { %832 = vrot.lane.b32.xlu1 %v2240_v9, %s2175_s8  ;;  %687 = vrot.lane.b32.xlu0 %v645_v53, %s2175_s8  ;;  %v2844_v53 = vpop.permute.xlu1 %619 }
  0xe1   :  { %v650_v47 = vmax.f32 %v4155_v19, %v2844_v53 }
  0xe4   :  { %468 = vrot.lane.b32.xlu1 %v2600_v25, %s2176_s9  ;;  %1025 = vrot.lane.b32.xlu0 %v2811_v28, %s2176_s9  ;;  %v2852_v43 = vpop.permute.xlu1 %621 }
  0xe8   :  { %834 = vrot.lane.b32.xlu1 %v4150_v22, %s2175_s8  ;;  %689 = vrot.lane.b32.xlu0 %v646_v34, %s2175_s8  ;;  %v971_v34 = vpop.permute.xlu0 %970  ;;  %v2866_v57 = vpop.permute.xlu1 %623 }
  0xe9   :  { %v2898_v18 = vsub.f32 %v4158_v13, %v971_v34 }
  0xec   :  { %470 = vrot.lane.b32.xlu1 %v2622_v38, %s2176_s9  ;;  %1027 = vrot.lane.b32.xlu0 %v2825_v33, %s2176_s9  ;;  %v973_v10 = vpop.permute.xlu0 %972 }
  0xed   :  { %v2918_v13 = vsub.f32 %v2366_v45, %v973_v10  ;;  %v652_v45 = vmax.f32 %v4163_v41, %v2866_v57 }
  0xf0   :  { %836 = vrot.lane.b32.xlu1 %v4151_v32, %s2175_s8  ;;  %691 = vrot.lane.b32.xlu0 %v647_v40, %s2175_s8  ;;  %v649_v40 = vmax.f32 %v4152_v46, %v2832_v59 }
  0xf1   :  { %v2868_v15 = vpop.permute.xlu0 %371 }
  0xf4   :  { %472 = vrot.lane.b32.xlu1 %v2624_v17, %s2176_s9  ;;  %1029 = vrot.lane.b32.xlu0 %v2842_v29, %s2176_s9 }
  0xf5   :  { %v2882_v23 = vpop.permute.xlu0 %375 }
  0xf8   :  { %838 = vrot.lane.b32.xlu1 %v4152_v46, %s2175_s8  ;;  %693 = vrot.lane.b32.xlu0 %v648_v21, %s2175_s8  ;;  %v2876_v21 = vpop.permute.xlu1 %369 }
  0xfc   :  { %383 = vrot.lane.b32.xlu1 %v4153_v56, %s2176_s9  ;;  %1031 = vrot.lane.b32.xlu0 %v2858_v37, %s2176_s9 }
 0x100   :  { %695 = vrot.lane.b32.xlu1 %v649_v40, %s2175_s8  ;;  %474 = vrot.lane.b32.xlu0 %v2646_v6, %s2176_s9  ;;  %v2890_v40 = vpop.permute.xlu1 %373  ;;  %v651_v6 = vmax.f32 %v4157_v30, %v2852_v43 }
 0x104   :  { %840 = vrot.lane.b32.xlu0 %v4155_v19, %s2175_s8  ;;  %1033 = vrot.lane.b32.xlu1 %v2874_v7, %s2176_s9 }
 0x108   :  { %385 = vrot.lane.b32.xlu0 %v4156_v27, %s2176_s9  ;;  %476 = vrot.lane.b32.xlu1 %v2642_v62, %s2176_s9  ;;  %v4159_v62 = vld [vmem:[#allocation20_spill] sm:$0xff] }
 0x10a   :  { %v2892_v36 = vpop.permute.xlu0 %291 }
 0x10c   :  { %697 = vrot.lane.b32.xlu0 %v650_v47, %s2175_s8  ;;  %842 = vrot.lane.b32.xlu1 %v4157_v30, %s2175_s8 }
 0x10e   :  { %v2900_v56 = vpop.permute.xlu1 %293  ;;  %v2902_v27 = vpop.permute.xlu0 %295 }
 0x110   :  { %387 = vrot.lane.b32.xlu1 %v4159_v62, %s2176_s9  ;;  %1035 = vrot.lane.b32.xlu0 %v2898_v18, %s2176_s9 }
 0x112   :  { %v2910_v47 = vpop.permute.xlu1 %297  ;;  %v2912_v63 = vpop.permute.xlu0 %299 }
 0x113   :  { %4160 = vst [vmem:[#allocation5_spill] sm:$0xff] %v2912_v63 }
 0x114   :  { %699 = vrot.lane.b32.xlu1 %v651_v6, %s2175_s8  ;;  %478 = vrot.lane.b32.xlu0 %v2670_v42, %s2176_s9  ;;  %v4166_v6 = vld [vmem:[#allocation23_spill] sm:$0xff] }
 0x116   :  { %v2920_v34 = vpop.permute.xlu1 %301  ;;  %v2922_v62 = vpop.permute.xlu0 %303 }
 0x117   :  { %4161 = vst [vmem:[#allocation7_spill] sm:$0xff] %v2920_v34  ;;  %4162 = vst [vmem:[#allocation6_spill] sm:$0xff] %v2922_v62  ;;  %v4169_v62 = vld [vmem:[#allocation10_spill] sm:$0xff] }
 0x118   :  { %844 = vrot.lane.b32.xlu0 %v4163_v41, %s2175_s8  ;;  %1037 = vrot.lane.b32.xlu1 %v2918_v13, %s2176_s9 }
 0x11a   :  { %v2928_v20 = vpop.permute.xlu1 %305  ;;  %v2930_v17 = vpop.permute.xlu0 %307 }
 0x11b   :  { %4164 = vst [vmem:[#allocation14_spill] sm:$0xff] %v2928_v20  ;;  %4165 = vst [vmem:[#allocation9_spill] sm:$0xff] %v2930_v17 }
 0x11c   :  { %389 = vrot.lane.b32.xlu0 %v4166_v6, %s2176_s9  ;;  %480 = vrot.lane.b32.xlu1 %v2666_v8, %s2176_s9  ;;  %v4172_v6 = vld [vmem:[#allocation22_spill] sm:$0xff] }
 0x11e   :  { %v2938_v10 = vpop.permute.xlu1 %309  ;;  %v2940_v42 = vpop.permute.xlu0 %311 }
 0x11f   :  { %4167 = vst [vmem:[#allocation8_spill] sm:$0xff] %v2938_v10  ;;  %4168 = vst [vmem:[#allocation13_spill] sm:$0xff] %v2940_v42  ;;  %v2992_v10 = vld [vmem:[%s4006_s1 + $0x61] sm:$0x1] }
 0x120   :  { %701 = vrot.lane.b32.xlu0 %v652_v45, %s2175_s8  ;;  %846 = vrot.lane.b32.xlu1 %v4169_v62, %s2175_s8  ;;  %4180 = vst [vmem:[#allocation49_spill] sm:$0xff] %v2992_v10 }
 0x122   :  { %v2945_v20 = vpop.permute.xlu1 %313  ;;  %v2947_v17 = vpop.permute.xlu0 %315 }
 0x123   :  { %4170 = vst [vmem:[#allocation11_spill] sm:$0xff] %v2945_v20  ;;  %4171 = vst [vmem:[#allocation10_spill] sm:$0xff] %v2947_v17 }
 0x124   :  { %391 = vrot.lane.b32.xlu1 %v4172_v6, %s2176_s9 }
 0x126   :  { %v2951_v8 = vpop.permute.xlu1 %625  ;;  %v975_v34 = vpop.permute.xlu0 %974 }
 0x127   :  { %4173 = vst [vmem:[#allocation45_spill] sm:$0xff] %v2951_v8  ;;  %v653_v41 = vmax.f32 %v4169_v62, %v2951_v8  ;;  %v2956_v42 = vsub.f32 %v2361_v44, %v975_v34 }
 0x129   :  { %703 = vrot.lane.b32.xlu1 %v653_v41, %s2175_s8  ;;  %1039 = vrot.lane.b32.xlu0 %v2956_v42, %s2176_s9  ;;  %v4176_v41 = vld [vmem:[#allocation12_spill] sm:$0xff] }
 0x12a   :  { %v2961_v45 = vpop.permute.xlu1 %627  ;;  %v977_v17 = vpop.permute.xlu0 %976 }
 0x12b   :  { %4174 = vst [vmem:[#allocation46_spill] sm:$0xff] %v2961_v45  ;;  %v2964_v20 = vsub.f32 %v2380_v49, %v977_v17  ;;  %v654_v6 = vmax.f32 %v4176_v41, %v2961_v45 }
 0x12d   :  { %482 = vrot.lane.b32.xlu0 %v2694_v61, %s2176_s9  ;;  %1041 = vrot.lane.b32.xlu1 %v2964_v20, %s2176_s9  ;;  %v4179_v61 = vld [vmem:[#allocation24_spill] sm:$0xff] }
 0x12e   :  { %v2970_v62 = vpop.permute.xlu1 %377  ;;  %v979_v44 = vpop.permute.xlu0 %978 }
 0x12f   :  { %v2973_v34 = vsub.f32 %v2375_v48, %v979_v44 }
 0x131   :  { %4175 = vst [vmem:[#allocation47_spill] sm:$0xff] %v2973_v34  ;;  %848 = vrot.lane.b32.xlu0 %v4176_v41, %s2175_s8  ;;  %484 = vrot.lane.b32.xlu1 %v2690_v31, %s2176_s9  ;;  %v1813_v41 = vmul.f32 0.5, %v2992_v10 }
 0x132   :  { %v2979_v49 = vpop.permute.xlu1 %381  ;;  %v2981_v17 = vpop.permute.xlu0 %379 }
 0x133   :  { %4177 = vst [vmem:[#allocation12_spill] sm:$0xff] %v2979_v49  ;;  %4178 = vst [vmem:[#allocation48_spill] sm:$0xff] %v2981_v17  ;;  %v655_v49 = vmin.f32 %v2214_v1, %v2744_v52 }
 0x135   :  { %393 = vrot.lane.b32.xlu0 %v4179_v61, %s2176_s9  ;;  %1043 = vrot.lane.b32.xlu1 %v2973_v34, %s2176_s9 }
 0x136   :  { %v827_v48 = vpop.permute.xlu1 %826  ;;  %v825_v44 = vpop.permute.xlu0 %824 }
 0x137   :  { %v2995_v31 = vsub.f32 %v2214_v1, %v825_v44  ;;  %v3008_v45 = vsub.f32 %v2226_v5, %v827_v48 }
 0x139   :  { %4181 = vst [vmem:[#allocation50_spill] sm:$0xff] %v2995_v31  ;;  %705 = vrot.lane.b32.xlu0 %v654_v6, %s2175_s8  ;;  %889 = vrot.lane.b32.xlu1 %v2995_v31, %s2176_s9  ;;  %v656_v31 = vmin.f32 %v2226_v5, %v2750_v54 }
 0x13a   :  { %v3001_v61 = vpop.permute.xlu1 %462  ;;  %v3003_v34 = vpop.permute.xlu0 %460 }
 0x13d   :  { %1815 = vrot.lane.b32.xlu0 %v1813_v41, %s2173_s17 }
 0x13e   :  { %v684_v44 = vpop.permute.xlu1 %683  ;;  %v682_v63 = vpop.permute.xlu0 %681 }
 0x13f   :  { %v3011_v6 = vsub.f32 %v655_v49, %v682_v63  ;;  %v3017_v17 = vsub.f32 %v656_v31, %v684_v44  ;;  %v657_v49 = vmin.f32 %v2209_v0, %v2773_v51 }
 0x141   :  { %4182 = vst [vmem:[#allocation51_spill] sm:$0xff] %v3011_v6  ;;  %891 = vrot.lane.b32.xlu0 %v3008_v45, %s2176_s9  ;;  %v4075_v1 = vmax.f32 %v3011_v6, 0.0  ;;  %v4082_v54 = vmax.f32 %v3017_v17, 0.0 }
 0x142   :  { %v1020_v10 = vpop.permute.xlu1 %1019  ;;  %v829_v8 = vpop.permute.xlu0 %828 }
 0x143   :  { %v3021_v52 = vsub.f32 %v2209_v0, %v829_v8  ;;  %v1058_v31 = vmul.f32 %v1020_v10, %v2769_v60 }
 0x145   :  { %759 = vrot.lane.b32.xlu0 %v4075_v1, %s2176_s9  ;;  %893 = vrot.lane.b32.xlu1 %v3021_v52, %s2176_s9  ;;  %v1071_v41 = vand.u32 2147483647, %v1058_v31 }
 0x146   :  { %v3028_v5 = vpop.permute.xlu1 %464  ;;  %v1022_v63 = vpop.permute.xlu0 %1021 }
 0x147   :  { %v1059_v44 = vmul.f32 %v1022_v63, %v2776_v11  ;;  %v658_v11 = vmin.f32 %v2219_v2, %v2788_v50 }
 0x149   :  { %761 = vrot.lane.b32.xlu1 %v4082_v54, %s2176_s9  ;;  %v1072_v51 = vand.u32 2147483647, %v1059_v44  ;;  %v500_v54 = vmul.f32 %v3001_v61, %v2758_v58  ;;  %v499_v61 = vmul.f32 %v3003_v34, %v2754_v16 }
 0x14a   :  { %v831_v8 = vpop.permute.xlu1 %830  ;;  %v686_v48 = vpop.permute.xlu0 %685 }
 0x14b   :  { %v3039_v1 = vsub.f32 %v2219_v2, %v831_v8  ;;  %v3041_v6 = vsub.f32 %v657_v49, %v686_v48  ;;  %v512_v16 = vand.u32 2147483647, %v499_v61 }
 0x14d   :  { %895 = vrot.lane.b32.xlu0 %v3039_v1, %s2176_s9  ;;  %1097 = vrot.lane.b32.xlu1 %v1071_v41, %s2174_s7  ;;  %v4080_v10 = vmax.f32 %v3041_v6, 0.0 }
 0x14e   :  { %v3046_v0 = vpop.permute.xlu1 %466  ;;  %v1024_v60 = vpop.permute.xlu0 %1023 }
 0x14f   :  { %v1060_v31 = vmul.f32 %v1024_v60, %v2795_v4  ;;  %v659_v60 = vmin.f32 %v2240_v9, %v2800_v3 }
 0x151   :  { %1099 = vrot.lane.b32.xlu0 %v1072_v51, %s2174_s7  ;;  %763 = vrot.lane.b32.xlu1 %v4080_v10, %s2176_s9  ;;  %v1073_v8 = vand.u32 2147483647, %v1060_v31 }
 0x152   :  { %v833_v63 = vpop.permute.xlu1 %832  ;;  %v688_v49 = vpop.permute.xlu0 %687 }
 0x153   :  { %v3057_v48 = vsub.f32 %v2240_v9, %v833_v63  ;;  %v3059_v41 = vsub.f32 %v658_v11, %v688_v49 }
 0x155   :  { %897 = vrot.lane.b32.xlu0 %v3057_v48, %s2176_s9  ;;  %1101 = vrot.lane.b32.xlu1 %v1073_v8, %s2174_s7  ;;  %v4079_v4 = vmax.f32 %v3059_v41, 0.0 }
 0x156   :  { %v3064_v2 = vpop.permute.xlu1 %468  ;;  %v1026_v50 = vpop.permute.xlu0 %1025 }
 0x157   :  { %v1061_v44 = vmul.f32 %v1026_v50, %v2811_v28  ;;  %v660_v50 = vmin.f32 %v4150_v22, %v2808_v12 }
 0x159   :  { %765 = vrot.lane.b32.xlu0 %v4079_v4, %s2176_s9  ;;  %v1074_v11 = vand.u32 2147483647, %v1061_v44 }
 0x15a   :  { %v835_v51 = vpop.permute.xlu1 %834  ;;  %v690_v31 = vpop.permute.xlu0 %689 }
 0x15b   :  { %v3074_v63 = vsub.f32 %v4150_v22, %v835_v51  ;;  %v3076_v49 = vsub.f32 %v659_v60, %v690_v31 }
 0x15d   :  { %899 = vrot.lane.b32.xlu1 %v3074_v63, %s2176_s9  ;;  %1103 = vrot.lane.b32.xlu0 %v1074_v11, %s2174_s7  ;;  %v4077_v3 = vmax.f32 %v3076_v49, 0.0 }
 0x15e   :  { %v3081_v28 = vpop.permute.xlu1 %470  ;;  %v1028_v9 = vpop.permute.xlu0 %1027 }
 0x15f   :  { %v1062_v8 = vmul.f32 %v1028_v9, %v2825_v33 }
 0x161   :  { %767 = vrot.lane.b32.xlu1 %v4077_v3, %s2176_s9  ;;  %v1075_v51 = vand.u32 2147483647, %v1062_v8  ;;  %v661_v8 = vmin.f32 %v4151_v32, %v2822_v39 }
 0x162   :  { %v837_v44 = vpop.permute.xlu1 %836  ;;  %v692_v60 = vpop.permute.xlu0 %691 }
 0x163   :  { %v3091_v31 = vsub.f32 %v4151_v32, %v837_v44  ;;  %v3093_v11 = vsub.f32 %v660_v50, %v692_v60 }
 0x165   :  { %901 = vrot.lane.b32.xlu0 %v3091_v31, %s2176_s9  ;;  %1105 = vrot.lane.b32.xlu1 %v1075_v51, %s2174_s7  ;;  %v4078_v22 = vmax.f32 %v3093_v11, 0.0 }
 0x166   :  { %v3098_v33 = vpop.permute.xlu1 %472  ;;  %v1030_v12 = vpop.permute.xlu0 %1029 }
 0x167   :  { %v1063_v9 = vmul.f32 %v1030_v12, %v2842_v29 }
 0x169   :  { %769 = vrot.lane.b32.xlu0 %v4078_v22, %s2176_s9  ;;  %v1076_v60 = vand.u32 2147483647, %v1063_v9 }
 0x16a   :  { %v839_v50 = vpop.permute.xlu1 %838  ;;  %v694_v44 = vpop.permute.xlu0 %693 }
 0x16b   :  { %v3108_v3 = vsub.f32 %v4152_v46, %v839_v50  ;;  %v3110_v51 = vsub.f32 %v661_v8, %v694_v44  ;;  %v662_v44 = vmin.f32 %v4152_v46, %v2832_v59  ;;  %v663_v59 = vmin.f32 %v4155_v19, %v2844_v53 }
 0x16d   :  { %903 = vrot.lane.b32.xlu1 %v3108_v3, %s2176_s9  ;;  %1107 = vrot.lane.b32.xlu0 %v1076_v60, %s2174_s7  ;;  %v4081_v32 = vmax.f32 %v3110_v51, 0.0 }
 0x16e   :  { %v3115_v29 = vpop.permute.xlu1 %383  ;;  %v1032_v39 = vpop.permute.xlu0 %1031 }
 0x16f   :  { %v1064_v12 = vmul.f32 %v1032_v39, %v2858_v37 }
 0x171   :  { %771 = vrot.lane.b32.xlu1 %v4081_v32, %s2176_s9  ;;  %v1077_v8 = vand.u32 2147483647, %v1064_v12 }
 0x172   :  { %v696_v9 = vpop.permute.xlu1 %695  ;;  %v3122_v50 = vpop.permute.xlu0 %474 }
 0x173   :  { %v3127_v4 = vsub.f32 %v662_v44, %v696_v9 }
 0x175   :  { %1109 = vrot.lane.b32.xlu1 %v1077_v8, %s2174_s7  ;;  %v4083_v12 = vmax.f32 %v3127_v4, 0.0 }
 0x176   :  { %v1034_v60 = vpop.permute.xlu1 %1033  ;;  %v841_v22 = vpop.permute.xlu0 %840 }
 0x177   :  { %v3130_v10 = vsub.f32 %v4155_v19, %v841_v22  ;;  %v1065_v46 = vmul.f32 %v1034_v60, %v2874_v7  ;;  %v4184_v7 = vld [vmem:[#allocation17_spill] sm:$0xff] }
 0x178   :  { %v409_v60 = vmul.f32 %v2868_v15, %v4184_v7 }
 0x179   :  { %905 = vrot.lane.b32.xlu0 %v3130_v10, %s2176_s9  ;;  %v1078_v8 = vand.u32 2147483647, %v1065_v46 }
 0x17a   :  { %v3134_v37 = vpop.permute.xlu1 %476  ;;  %v3136_v39 = vpop.permute.xlu0 %385 }
 0x17d   :  { %773 = vrot.lane.b32.xlu0 %v4083_v12, %s2176_s9  ;;  %v4185_v12 = vld [vmem:[#allocation15_spill] sm:$0xff] }
 0x17e   :  { %v843_v22 = vpop.permute.xlu1 %842  ;;  %v698_v9 = vpop.permute.xlu0 %697  ;;  %v408_v15 = vmul.f32 %v2876_v21, %v4185_v12  ;;  %v3186_v21 = vld [vmem:[%s4005_s0 + $0x50] sm:$0xff] }
 0x17f   :  { %v3146_v44 = vsub.f32 %v4157_v30, %v843_v22  ;;  %v3148_v32 = vsub.f32 %v663_v59, %v698_v9  ;;  %v513_v59 = vand.u32 2147483647, %v500_v54  ;;  %v422_v9 = vand.u32 2147483647, %v409_v60  ;;  %4189 = vst [vmem:[#allocation15_spill] sm:$0xff] %v3186_v21 }
 0x181   :  { %4183 = vst [vmem:[#allocation52_spill] sm:$0xff] %v3148_v32  ;;  %907 = vrot.lane.b32.xlu1 %v3146_v44, %s2176_s9  ;;  %1111 = vrot.lane.b32.xlu0 %v1078_v8, %s2174_s7  ;;  %v4084_v46 = vmax.f32 %v3148_v32, 0.0 }
 0x182   :  { %v3155_v19 = vpop.permute.xlu1 %387  ;;  %v1036_v53 = vpop.permute.xlu0 %1035 }
 0x183   :  { %v1066_v30 = vmul.f32 %v1036_v53, %v2898_v18  ;;  %v3173_v18 = vld [vmem:[%s4005_s0 + $0x48] sm:$0xff]  ;;  %v526_v53 = vadd.f32 %v513_v59, %v422_v9 }
 0x184   :  { %4186 = vst [vmem:[#allocation17_spill] sm:$0xff] %v3173_v18  ;;  %v664_v54 = vmin.f32 %v3173_v18, %v2852_v43  ;;  %v421_v43 = vand.u32 2147483647, %v408_v15 }
 0x185   :  { %775 = vrot.lane.b32.xlu1 %v4084_v46, %s2176_s9  ;;  %v1079_v8 = vand.u32 2147483647, %v1066_v30  ;;  %v4187_v46 = vld [vmem:[#allocation27_spill] sm:$0xff] }
 0x186   :  { %v700_v58 = vpop.permute.xlu1 %699  ;;  %v3166_v22 = vpop.permute.xlu0 %478  ;;  %v4188_v60 = vmax.f32 %v4187_v46, 0.0  ;;  %v525_v61 = vadd.f32 %v512_v16, %v421_v43  ;;  %v4193_v16 = vld [vmem:[#allocation16_spill] sm:$0xff] }
 0x187   :  { %v3181_v32 = vsub.f32 %v664_v54, %v700_v58  ;;  %v4191_v54 = vld [vmem:[#allocation25_spill] sm:$0xff] }
 0x188   :  { %v331_v30 = vmul.f32 %v2900_v56, %v4188_v60  ;;  %v501_v56 = vmul.f32 %v3028_v5, %v2784_v24  ;;  %v410_v60 = vmul.f32 %v2890_v40, %v4193_v16  ;;  %v4194_v24 = vld [vmem:[#allocation18_spill] sm:$0xff] }
 0x189   :  { %1113 = vrot.lane.b32.xlu1 %v1079_v8, %s2174_s7  ;;  %v4090_v58 = vmax.f32 %v3181_v32, 0.0  ;;  %v3221_v40 = vld [vmem:[%s4005_s0 + $0x58] sm:$0xff] }
 0x18a   :  { %v1038_v34 = vpop.permute.xlu1 %1037  ;;  %v845_v7 = vpop.permute.xlu0 %844  ;;  %v539_v59 = vsub.f32 %v526_v53, %v331_v30  ;;  %v665_v53 = vmin.f32 %v3186_v21, %v2866_v57  ;;  %4195 = vst [vmem:[#allocation25_spill] sm:$0xff] %v3221_v40 }
 0x18b   :  { %v3189_v12 = vsub.f32 %v3186_v21, %v845_v7  ;;  %v1067_v8 = vmul.f32 %v1038_v34, %v2918_v13  ;;  %v4192_v7 = vmax.f32 %v4191_v54, 0.0  ;;  %v411_v13 = vmul.f32 %v2882_v23, %v4194_v24  ;;  %v4197_v24 = vld [vmem:[#allocation26_spill] sm:$0xff] }
 0x18c   :  { %v552_v43 = vadd.f32 1e-06, %v539_v59  ;;  %v514_v54 = vand.u32 2147483647, %v501_v56  ;;  %v423_v59 = vand.u32 2147483647, %v410_v60 }
 0x18d   :  { %4190 = vst [vmem:[#allocation27_spill] sm:$0xff] %v3189_v12  ;;  %909 = vrot.lane.b32.xlu0 %v3189_v12, %s2176_s9  ;;  %v3204_v15 = vmul.f32 %v2892_v36, %v4192_v7  ;;  %v502_v12 = vmul.f32 %v3046_v0, %v2598_v55  ;;  %v1080_v57 = vand.u32 2147483647, %v1067_v8 }
 0x18e   :  { %v3193_v9 = vpop.permute.xlu1 %480  ;;  %v3195_v46 = vpop.permute.xlu0 %389  ;;  %2055 = vrcp.f32 %v552_v43  ;;  %v527_v8 = vadd.f32 %v514_v54, %v423_v59 }
 0x18f   :  { %v538_v36 = vsub.f32 %v525_v61, %v3204_v15  ;;  %v515_v7 = vand.u32 2147483647, %v502_v12  ;;  %v424_v61 = vand.u32 2147483647, %v411_v13  ;;  %v4199_v12 = vmax.f32 %v2614_v35, 0.0 }
 0x191   :  { %777 = vrot.lane.b32.xlu0 %v4090_v58, %s2176_s9  ;;  %v551_v56 = vadd.f32 1e-06, %v538_v36  ;;  %v528_v60 = vadd.f32 %v515_v7, %v424_v61  ;;  %v3245_v43 = vmul.f32 %v2910_v47, %v4199_v12  ;;  %v503_v61 = vmul.f32 %v3064_v2, %v2600_v25  ;;  %v4238_v58 = vld [vmem:[#allocation36_spill] sm:$0xff] }
 0x192   :  { %v847_v5 = vpop.permute.xlu1 %846  ;;  %v702_v34 = vpop.permute.xlu0 %701  ;;  %v412_v47 = vmul.f32 %v2970_v62, %v2726_v26 }
 0x193   :  { %v3224_v55 = vsub.f32 %v3221_v40, %v847_v5  ;;  %v3226_v0 = vsub.f32 %v665_v53, %v702_v34  ;;  %v4198_v5 = vmax.f32 %v4197_v24, 0.0  ;;  %2057 = vrcp.f32 %v551_v56 }
 0x194   :  { %v516_v25 = vand.u32 2147483647, %v503_v61  ;;  %v4205_v61 = vld [vmem:[#allocation28_spill] sm:$0xff] }
 0x195   :  { %4196 = vst [vmem:[#allocation16_spill] sm:$0xff] %v3226_v0  ;;  %911 = vrot.lane.b32.xlu1 %v3224_v55, %s2176_s9  ;;  %1115 = vrot.lane.b32.xlu0 %v1080_v57, %s2174_s7  ;;  %v4089_v16 = vmax.f32 %v3226_v0, 0.0  ;;  %v3237_v53 = vmul.f32 %v2902_v27, %v4198_v5  ;;  %v541_v27 = vsub.f32 %v528_v60, %v3245_v43  ;;  %v4200_v60 = vld [vmem:[#allocation48_spill] sm:$0xff] }
 0x196   :  { %v3231_v23 = vpop.permute.xlu1 %391  ;;  %v413_v12 = vmul.f32 %v4200_v60, %v2734_v14  ;;  %v4209_v60 = vld [vmem:[#allocation46_spill] sm:$0xff] }
 0x197   :  { %v540_v13 = vsub.f32 %v527_v8, %v3237_v53  ;;  %v554_v56 = vadd.f32 1e-06, %v541_v27 }
 0x198   :  { %v2056_v59 = vpop.eup %2055 }
 0x199   :  { %779 = vrot.lane.b32.xlu1 %v4089_v16, %s2176_s9  ;;  %v553_v7 = vadd.f32 1e-06, %v540_v13  ;;  %v567_v5 = vmul.f32 %v2056_v59, %v331_v30  ;;  %v3265_v13 = vld [vmem:[%s4005_s0 + $0x60] sm:$0x3] }
 0x19a   :  { %4201 = vst [vmem:[#allocation18_spill] sm:$0xff] %v3265_v13 }
 0x19b   :  { %v704_v36 = vpop.permute.xlu1 %703  ;;  %v1040_v34 = vpop.permute.xlu0 %1039  ;;  %2059 = vrcp.f32 %v553_v7 }
 0x19c   :  { %v1068_v54 = vmul.f32 %v1040_v34, %v2956_v42  ;;  %v504_v42 = vmul.f32 %v3081_v28, %v2622_v38  ;;  %2061 = vrcp.f32 %v554_v56  ;;  %v4203_v28 = vld [vmem:[#allocation45_spill] sm:$0xff]  ;;  %v426_v34 = vand.u32 2147483647, %v413_v12 }
 0x19d   :  { %v2058_v38 = vpop.eup %2057  ;;  %v666_v14 = vmin.f32 %v3221_v40, %v4203_v28  ;;  %v667_v12 = vmin.f32 %v3265_v13, %v4209_v60  ;;  %v4213_v28 = vld [vmem:[#allocation44_spill] sm:$0xff] }
 0x19e   :  { %v1081_v57 = vand.u32 2147483647, %v1068_v54  ;;  %v517_v62 = vand.u32 2147483647, %v504_v42  ;;  %v565_v7 = vmul.f32 %v2058_v38, %v3204_v15 }
 0x19f   :  { %v1042_v24 = vpop.permute.xlu1 %1041  ;;  %v3252_v35 = vpop.permute.xlu0 %482  ;;  %v3279_v59 = vsub.f32 %v666_v14, %v704_v36  ;;  %v4214_v14 = vld [vmem:[#allocation12_spill] sm:$0xff] }
 0x1a0   :  { %1117 = vrot.lane.b32.xlu1 %v1081_v57, %s2174_s7  ;;  %v1069_v8 = vmul.f32 %v1042_v24, %v2964_v20  ;;  %v425_v20 = vand.u32 2147483647, %v412_v47  ;;  %v4206_v24 = vmax.f32 %v4205_v61, 0.0  ;;  %v4207_v47 = vld [vmem:[#allocation5_spill] sm:$0xff]  ;;  %v530_v42 = vadd.f32 %v517_v62, %v426_v34 }
 0x1a1   :  { %4204 = vst [vmem:[#allocation48_spill] sm:$0xff] %v3279_v59  ;;  %v414_v15 = vmul.f32 %v4214_v14, %v4213_v28  ;;  %v4087_v61 = vmax.f32 %v3279_v59, 0.0  ;;  %v4217_v28 = vld [vmem:[#allocation30_spill] sm:$0xff] }
 0x1a2   :  { %v1082_v30 = vand.u32 2147483647, %v1069_v8  ;;  %v529_v54 = vadd.f32 %v516_v25, %v425_v20  ;;  %v334_v56 = vmul.f32 %v4207_v47, %v4206_v24  ;;  %v4208_v8 = vld [vmem:[#allocation29_spill] sm:$0xff]  ;;  %v4210_v25 = vld [vmem:[#allocation31_spill] sm:$0xff]  ;;  %v4218_v14 = vmax.f32 %v4217_v28, 0.0 }
 0x1a3   :  { %v849_v2 = vpop.permute.xlu0 %848  ;;  %v3275_v27 = vpop.permute.xlu1 %484  ;;  %v4211_v36 = vmax.f32 %v4210_v25, 0.0  ;;  %v427_v60 = vand.u32 2147483647, %v414_v15  ;;  %v4225_v28 = vld [vmem:[#allocation21_spill] sm:$0xff] }
 0x1a4   :  { %v3268_v26 = vsub.f32 %v3265_v13, %v849_v2  ;;  %1216 = vrot.lane.b32.xlu1 %v567_v5, %s2177_s21  ;;  %v505_v5 = vmul.f32 %v3098_v33, %v4208_v8  ;;  %v4212_v2 = vld [vmem:[#allocation7_spill] sm:$0xff]  ;;  %v542_v38 = vsub.f32 %v529_v54, %v334_v56 }
 0x1a5   :  { %v335_v20 = vmul.f32 %v4212_v2, %v4211_v36  ;;  %v2060_v34 = vpop.eup %2059  ;;  %v4216_v36 = vld [vmem:[#allocation47_spill] sm:$0xff] }
 0x1a6   :  { %4202 = vst [vmem:[#allocation26_spill] sm:$0xff] %v3268_v26  ;;  %913 = vrot.lane.b32.xlu0 %v3268_v26, %s2176_s9  ;;  %v518_v24 = vand.u32 2147483647, %v505_v5  ;;  %v555_v25 = vadd.f32 1e-06, %v542_v38 }
 0x1a7   :  { %v3277_v57 = vpop.permute.xlu0 %393  ;;  %v543_v33 = vsub.f32 %v530_v42, %v335_v20  ;;  %v1044_v47 = vpop.permute.xlu1 %1043 }
 0x1a8   :  { %1119 = vrot.lane.b32.xlu1 %v1082_v30, %s2174_s7  ;;  %v1070_v54 = vmul.f32 %v1044_v47, %v4216_v36  ;;  %v531_v5 = vadd.f32 %v518_v24, %v427_v60  ;;  %2063 = vrcp.f32 %v555_v25  ;;  %v4220_v47 = vld [vmem:[#allocation33_spill] sm:$0xff]  ;;  %v4222_v24 = vld [vmem:[#allocation19_spill] sm:$0xff] }
 0x1a9   :  { %v556_v42 = vadd.f32 1e-06, %v543_v33  ;;  %v3331_v60 = vld [vmem:[%s4005_s0] sm:$0xff] }
 0x1aa   :  { %1214 = vrot.lane.b32.xlu0 %v565_v7, %s2177_s21  ;;  %v2062_v7 = vpop.eup %2061  ;;  %v1083_v15 = vand.u32 2147483647, %v1070_v54  ;;  %4223 = vst [vmem:[#allocation5_spill] sm:$0xff] %v3331_v60 }
 0x1ab   :  { %v706_v30 = vpop.permute.xlu0 %705  ;;  %v571_v2 = vmul.f32 %v2062_v7, %v3245_v43  ;;  %2065 = vrcp.f32 %v556_v42  ;;  %v3322_v43 = vld [vmem:[%s4005_s0 + $0x8] sm:$0xff]  ;;  %v415_v7 = vmul.f32 %v3115_v29, %v4222_v24 }
 0x1ac   :  { %v3297_v62 = vsub.f32 %v667_v12, %v706_v30  ;;  %v569_v12 = vmul.f32 %v2060_v34, %v3237_v53  ;;  %v4219_v30 = vld [vmem:[#allocation6_spill] sm:$0xff]  ;;  %v506_v53 = vmul.f32 %v3122_v50, %v4220_v47  ;;  %v3317_v34 = vpop.permute.xlu1 %889  ;;  %4221 = vst [vmem:[#allocation28_spill] sm:$0xff] %v3322_v43  ;;  %v4230_v24 = vld [vmem:[#allocation37_spill] sm:$0xff] }
 0x1ae   :  { %4215 = vst [vmem:[#allocation45_spill] sm:$0xff] %v3297_v62  ;;  %v4088_v8 = vmax.f32 %v3297_v62, 0.0  ;;  %781 = vrot.lane.b32.xlu0 %v4087_v61, %s2176_s9  ;;  %v336_v61 = vmul.f32 %v4219_v30, %v4218_v14  ;;  %v519_v50 = vand.u32 2147483647, %v506_v53  ;;  %v416_v14 = vmul.f32 %v3136_v39, %v4225_v28  ;;  %v3348_v30 = vld [vmem:[%s4005_s0 + $0x10] sm:$0xff] }
 0x1af   :  { %v1816_v25 = vpop.permute.xlu0 %1815  ;;  %4226 = vst [vmem:[#allocation29_spill] sm:$0xff] %v3348_v30  ;;  %v4229_v53 = vld [vmem:[#allocation14_spill] sm:$0xff] }
 0x1b0   :  { %783 = vrot.lane.b32.xlu1 %v4088_v8, %s2176_s9  ;;  %v544_v38 = vsub.f32 %v531_v5, %v336_v61  ;;  %v4224_v5 = vld [vmem:[#allocation32_spill] sm:$0xff]  ;;  %v429_v28 = vand.u32 2147483647, %v416_v14 }
 0x1b2   :  { %1218 = vrot.lane.b32.xlu0 %v569_v12, %s2177_s21  ;;  %v557_v33 = vadd.f32 1e-06, %v544_v38  ;;  %v2064_v54 = vpop.eup %2063  ;;  %v428_v12 = vand.u32 2147483647, %v415_v7  ;;  %v4227_v38 = vld [vmem:[#allocation35_spill] sm:$0xff] }
 0x1b3   :  { %v4228_v47 = vmax.f32 %v4227_v38, 0.0  ;;  %v3359_v7 = vpop.permute.xlu0 %891 }
 0x1b4   :  { %1220 = vrot.lane.b32.xlu1 %v571_v2, %s2177_s21  ;;  %2067 = vrcp.f32 %v557_v33  ;;  %v532_v42 = vadd.f32 %v519_v50, %v428_v12  ;;  %v507_v2 = vmul.f32 %v3134_v37, %v4224_v5  ;;  %v508_v37 = vmul.f32 %v3166_v22, %v4230_v24 }
 0x1b5   :  { %v2066_v29 = vpop.eup %2065  ;;  %v3355_v33 = vmul.f32 %v4229_v53, %v4228_v47 }
 0x1b6   :  { %1121 = vrot.lane.b32.xlu0 %v1083_v15, %s2174_s7  ;;  %v573_v15 = vmul.f32 %v2064_v54, %v334_v56  ;;  %v575_v50 = vmul.f32 %v2066_v29, %v335_v20  ;;  %v520_v5 = vand.u32 2147483647, %v507_v2  ;;  %v4231_v56 = vld [vmem:[#allocation20_spill] sm:$0xff]  ;;  %v521_v38 = vand.u32 2147483647, %v508_v37  ;;  %v4232_v2 = vld [vmem:[#allocation34_spill] sm:$0xff] }
 0x1b7   :  { %v3335_v36 = vpop.permute.xlu1 %893  ;;  %v545_v12 = vsub.f32 %v532_v42, %v3355_v33  ;;  %v417_v54 = vmul.f32 %v3155_v19, %v4231_v56  ;;  %v3373_v20 = vld [vmem:[%s4005_s0 + $0x61] sm:$0x1]  ;;  %v3375_v29 = vpop.permute.xlu0 %759  ;;  %v3382_v19 = vld [vmem:[%s4005_s0 + $0x18] sm:$0xff]  ;;  %v4233_v14 = vmax.f32 %v4232_v2, 0.0  ;;  %v509_v2 = vmul.f32 %v3193_v9, %v4238_v58 }
 0x1b8   :  { %1294 = vrot.lane.b32.xlu1 %v3322_v43, %s2178_s24  ;;  %v533_v53 = vadd.f32 %v520_v5, %v429_v28  ;;  %v4237_v28 = vld [vmem:[#allocation8_spill] sm:$0xff]  ;;  %v1806_v8 = vmul.f32 0.5, %v3373_v20  ;;  %v4241_v9 = vld [vmem:[#allocation22_spill] sm:$0xff] }
 0x1b9   :  { %v558_v47 = vadd.f32 1e-06, %v545_v12  ;;  %v430_v24 = vand.u32 2147483647, %v417_v54  ;;  %v4235_v12 = vld [vmem:[#allocation39_spill] sm:$0xff]  ;;  %v419_v58 = vmul.f32 %v3231_v23, %v4241_v9 }
 0x1ba   :  { %1292 = vrot.lane.b32.xlu0 %v3331_v60, %s2178_s24  ;;  %v4236_v5 = vmax.f32 %v4235_v12, 0.0  ;;  %v4240_v12 = vld [vmem:[#allocation41_spill] sm:$0xff] }
 0x1bb   :  { %v3361_v39 = vpop.permute.xlu1 %761  ;;  %2069 = vrcp.f32 %v558_v47 }
 0x1bc   :  { %1359 = vrot.lane.b32.xlu1 %v3322_v43, %s2179_s27  ;;  %v3394_v56 = vmul.f32 %v4237_v28, %v4236_v5 }
 0x1be   :  { %1357 = vrot.lane.b32.xlu0 %v3331_v60, %s2179_s27  ;;  %v2068_v22 = vpop.eup %2067 }
 0x1bf   :  { %v3377_v42 = vpop.permute.xlu1 %1097  ;;  %v577_v54 = vmul.f32 %v2068_v22, %v336_v61  ;;  %v510_v61 = vmul.f32 %v3252_v35, %v4240_v12  ;;  %v4245_v12 = vld [vmem:[#allocation38_spill] sm:$0xff] }
 0x1c0   :  { %1296 = vrot.lane.b32.xlu1 %v3348_v30, %s2178_s24 }
 0x1c2   :  { %1222 = vrot.lane.b32.xlu0 %v573_v15, %s2177_s21  ;;  %v4234_v15 = vld [vmem:[#allocation9_spill] sm:$0xff] }
 0x1c3   :  { %v3389_v37 = vmul.f32 %v4234_v15, %v4233_v14  ;;  %v4239_v14 = vld [vmem:[#allocation23_spill] sm:$0xff]  ;;  %v3410_v22 = vpop.permute.xlu1 %763 }
 0x1c4   :  { %1224 = vrot.lane.b32.xlu1 %v575_v50, %s2177_s21  ;;  %v534_v50 = vadd.f32 %v521_v38, %v430_v24  ;;  %v418_v38 = vmul.f32 %v3195_v46, %v4239_v14  ;;  %v3404_v24 = vpop.permute.xlu0 %895  ;;  %v4242_v46 = vld [vmem:[#allocation49_spill] sm:$0xff] }
 0x1c5   :  { %v546_v16 = vsub.f32 %v533_v53, %v3389_v37  ;;  %v522_v53 = vand.u32 2147483647, %v509_v2  ;;  %v3416_v28 = vadd.f32 %v1816_v25, %v4242_v46  ;;  %v432_v2 = vand.u32 2147483647, %v419_v58  ;;  %v4251_v58 = vld [vmem:[#allocation24_spill] sm:$0xff] }
 0x1c6   :  { %1361 = vrot.lane.b32.xlu0 %v3348_v30, %s2179_s27  ;;  %v547_v15 = vsub.f32 %v534_v50, %v3394_v56  ;;  %v431_v5 = vand.u32 2147483647, %v418_v38  ;;  %v3421_v50 = vld [vmem:[%s4005_s0 + $0x20] sm:$0xff]  ;;  %v2070_v38 = vpop.eup %2069  ;;  %v420_v59 = vmul.f32 %v3277_v57, %v4251_v58 }
 0x1c7   :  { %v559_v47 = vadd.f32 1e-06, %v546_v16  ;;  %4243 = vst [vmem:[#allocation46_spill] sm:$0xff] %v3416_v28  ;;  %v3426_v16 = vsub.f32 %v4242_v46, %v1816_v25  ;;  %v3432_v14 = vpop.permute.xlu1 %1101  ;;  %v4248_v46 = vld [vmem:[#allocation43_spill] sm:$0xff] }
 0x1c8   :  { %1363 = vrot.lane.b32.xlu1 %v3382_v19, %s2179_s27  ;;  %v560_v35 = vadd.f32 1e-06, %v547_v15  ;;  %v535_v23 = vadd.f32 %v522_v53, %v431_v5  ;;  %v4246_v15 = vmax.f32 %v4245_v12, 0.0  ;;  %v4249_v62 = vmax.f32 %v4248_v46, 0.0 }
 0x1c9   :  { %4244 = vst [vmem:[#allocation31_spill] sm:$0xff] %v3426_v16  ;;  %2071 = vrcp.f32 %v559_v47  ;;  %v4250_v47 = vld [vmem:[#allocation11_spill] sm:$0xff]  ;;  %v3463_v57 = vsub.f32 %v3416_v28, %v3426_v16 }
 0x1ca   :  { %1298 = vrot.lane.b32.xlu0 %v3382_v19, %s2178_s24  ;;  %2073 = vrcp.f32 %v560_v35  ;;  %v341_v53 = vmul.f32 %v4250_v47, %v4249_v62  ;;  %v3453_v35 = vld [vmem:[%s4005_s0 + $0x28] sm:$0xff] }
 0x1cb   :  { %v4252_v62 = vld [vmem:[#allocation40_spill] sm:$0xff]  ;;  %4253 = vst [vmem:[#allocation7_spill] sm:$0xff] %v3463_v57 }
 0x1cc   :  { %1226 = vrot.lane.b32.xlu1 %v577_v54, %s2177_s21  ;;  %v523_v54 = vand.u32 2147483647, %v510_v61  ;;  %v4247_v61 = vld [vmem:[#allocation13_spill] sm:$0xff] }
 0x1cd   :  { %v340_v9 = vmul.f32 %v4247_v61, %v4246_v15  ;;  %v433_v15 = vand.u32 2147483647, %v420_v59  ;;  %v3476_v59 = vld [vmem:[%s4005_s0 + $0x30] sm:$0xff] }
 0x1ce   :  { %1808 = vrot.lane.b32.xlu0 %v1806_v8, %s2173_s17  ;;  %v3428_v8 = vpop.permute.xlu0 %1099  ;;  %v536_v25 = vadd.f32 %v523_v54, %v432_v2  ;;  %v579_v54 = vmul.f32 %v2070_v38, %v3355_v33 }
 0x1cf   :  { %v548_v5 = vsub.f32 %v535_v23, %v340_v9  ;;  %v3448_v0 = vpop.permute.xlu1 %899  ;;  %v511_v23 = vmul.f32 %v3275_v27, %v4252_v62 }
 0x1d0   :  { %1365 = vrot.lane.b32.xlu1 %v3421_v50, %s2179_s27  ;;  %v549_v2 = vsub.f32 %v536_v25, %v341_v53 }
 0x1d1   :  { %v561_v12 = vadd.f32 1e-06, %v548_v5  ;;  %v524_v47 = vand.u32 2147483647, %v511_v23  ;;  %v4254_v5 = vld [vmem:[#allocation42_spill] sm:$0xff] }
 0x1d2   :  { %1300 = vrot.lane.b32.xlu0 %v3421_v50, %s2178_s24  ;;  %v3446_v26 = vpop.permute.xlu0 %897  ;;  %v562_v46 = vadd.f32 1e-06, %v549_v2  ;;  %v4256_v2 = vld [vmem:[#allocation10_spill] sm:$0xff] }
 0x1d3   :  { %v2072_v61 = vpop.eup %2071  ;;  %v3469_v33 = vpop.permute.xlu1 %767  ;;  %2075 = vrcp.f32 %v561_v12  ;;  %v537_v38 = vadd.f32 %v524_v47, %v433_v15 }
 0x1d4   :  { %1854 = vrot.lane.b32.xlu1 %v3416_v28, %s2174_s7  ;;  %v2074_v27 = vpop.eup %2073  ;;  %v581_v25 = vmul.f32 %v2072_v61, %v3389_v37  ;;  %2077 = vrcp.f32 %v562_v46  ;;  %v3500_v46 = vld [vmem:[%s4005_s0 + $0x38] sm:$0xff] }
 0x1d5   :  { %v583_v23 = vmul.f32 %v2074_v27, %v3394_v56 }
 0x1d6   :  { %1849 = vrot.lane.b32.xlu0 %v3426_v16, %s2174_s7  ;;  %v3467_v58 = vpop.permute.xlu0 %765 }
 0x1d7   :  { %v3488_v47 = vpop.permute.xlu1 %1105 }
 0x1d8   :  { %1302 = vrot.lane.b32.xlu1 %v3453_v35, %s2178_s24 }
 0x1da   :  { %1228 = vrot.lane.b32.xlu0 %v579_v54, %s2177_s21  ;;  %v4255_v54 = vmax.f32 %v4254_v5, 0.0  ;;  %v3486_v15 = vpop.permute.xlu0 %1103 }
 0x1dc   :  { %1838 = vrot.lane.b32.xlu1 %v3463_v57, %s2176_s9  ;;  %v342_v62 = vmul.f32 %v4256_v2, %v4255_v54 }
 0x1dd   :  { %v2076_v56 = vpop.eup %2075 }
 0x1de   :  { %1367 = vrot.lane.b32.xlu0 %v3453_v35, %s2179_s27  ;;  %v550_v12 = vsub.f32 %v537_v38, %v342_v62  ;;  %v3493_v61 = vpop.permute.xlu0 %901  ;;  %v2078_v27 = vpop.eup %2077  ;;  %v3509_v38 = vld [vmem:[%s4005_s0 + $0x40] sm:$0xff] }
 0x1df   :  { %v3495_v5 = vpop.permute.xlu1 %903  ;;  %4257 = vst [vmem:[#allocation44_spill] sm:$0xff] %v3509_v38 }
 0x1e0   :  { %1304 = vrot.lane.b32.xlu1 %v3476_v59, %s2178_s24  ;;  %v563_v37 = vadd.f32 1e-06, %v550_v12 }
 0x1e2   :  { %1230 = vrot.lane.b32.xlu0 %v581_v25, %s2177_s21  ;;  %2079 = vrcp.f32 %v563_v37  ;;  %v585_v25 = vmul.f32 %v2076_v56, %v340_v9  ;;  %v3513_v54 = vpop.permute.xlu0 %769 }
 0x1e3   :  { %v3515_v2 = vpop.permute.xlu1 %771 }
 0x1e4   :  { %1232 = vrot.lane.b32.xlu1 %v583_v23, %s2177_s21  ;;  %v587_v23 = vmul.f32 %v2078_v27, %v341_v53 }
 0x1e6   :  { %1369 = vrot.lane.b32.xlu0 %v3476_v59, %s2179_s27  ;;  %v3521_v12 = vpop.permute.xlu0 %1107 }
 0x1e7   :  { %v3523_v37 = vpop.permute.xlu1 %1109 }
 0x1e8   :  { %1371 = vrot.lane.b32.xlu1 %v3500_v46, %s2179_s27 }
 0x1ea   :  { %1306 = vrot.lane.b32.xlu0 %v3500_v46, %s2178_s24 }
 0x1eb   :  { %v3529_v56 = vpop.permute.xlu0 %905 }
 0x1ec   :  { %1308 = vrot.lane.b32.xlu1 %v3509_v38, %s2178_s24  ;;  %v2080_v9 = vpop.eup %2079 }
 0x1ed   :  { %v589_v53 = vmul.f32 %v2080_v9, %v342_v62  ;;  %v929_v9 = vmul.f32 %v3359_v7, %v3008_v45  ;;  %v4260_v7 = vmax.f32 %v3017_v17, 0.0 }
 0x1ee   :  { %1234 = vrot.lane.b32.xlu0 %v585_v25, %s2177_s21 }
 0x1ef   :  { %v3538_v27 = vpop.permute.xlu0 %773 }
 0x1f0   :  { %1236 = vrot.lane.b32.xlu1 %v587_v23, %s2177_s21 }
 0x1f2   :  { %1373 = vrot.lane.b32.xlu0 %v3509_v38, %s2179_s27 }
 0x1f3   :  { %v3531_v25 = vpop.permute.xlu1 %907  ;;  %v3548_v28 = vpop.permute.xlu0 %1111 }
 0x1f4   :  { %1375 = vrot.lane.b32.xlu1 %v3173_v18, %s2179_s27 }
 0x1f6   :  { %1310 = vrot.lane.b32.xlu0 %v3173_v18, %s2178_s24  ;;  %v942_v18 = vand.u32 2147483647, %v929_v9  ;;  %v4262_v9 = vld [vmem:[#allocation51_spill] sm:$0xff] }
 0x1f7   :  { %v3540_v23 = vpop.permute.xlu1 %775  ;;  %v4263_v57 = vmax.f32 %v4262_v9, 0.0 }
 0x1f8   :  { %1312 = vrot.lane.b32.xlu1 %v3186_v21, %s2178_s24  ;;  %v1137_v45 = vadd.f32 %v3428_v8, %v942_v18 }
 0x1fa   :  { %1238 = vrot.lane.b32.xlu0 %v589_v53, %s2177_s21  ;;  %v4258_v53 = vld [vmem:[#allocation50_spill] sm:$0xff]  ;;  %s2182_s21 = smov 120  }
 0x1fb   :  { %v3550_v62 = vpop.permute.xlu1 %1113  ;;  %v928_v16 = vmul.f32 %v3317_v34, %v4258_v53 }
 0x1fc   :  { %1314 = vrot.lane.b32.xlu1 %v3221_v40, %s2178_s24 }
 0x1fe   :  { %1377 = vrot.lane.b32.xlu0 %v3186_v21, %s2179_s27 }
 0x1ff   :  { %v3560_v21 = vpop.permute.xlu0 %909 }
 0x200   :  { %1316 = vrot.lane.b32.xlu1 %v3265_v13, %s2178_s24 }
 0x202   :  { %1379 = vrot.lane.b32.xlu0 %v3221_v40, %s2179_s27 }
 0x203   :  { %v3573_v53 = vpop.permute.xlu0 %777 }
 0x204   :  { %1591 = vrot.lane.b32.xlu1 %v3331_v60, %s2180_s20  ;;  %v941_v60 = vand.u32 2147483647, %v928_v16 }
 0x206   :  { %1381 = vrot.lane.b32.xlu0 %v3265_v13, %s2179_s27  ;;  %v799_v13 = vmul.f32 %v3361_v39, %v4260_v7  ;;  %v1136_v34 = vadd.f32 %v3377_v42, %v941_v60  ;;  %v931_v39 = vmul.f32 %v3404_v24, %v3039_v1  ;;  %v932_v1 = vmul.f32 %v3446_v26, %v3057_v48 }
 0x207   :  { %v3562_v40 = vpop.permute.xlu1 %911  ;;  %v3586_v42 = vpop.permute.xlu0 %1115 }
 0x208   :  { %4259 = vst [vmem:[#allocation12_spill] sm:$0xff] %v3562_v40  ;;  %1595 = vrot.lane.b32.xlu1 %v3348_v30, %s2180_s20  ;;  %v930_v30 = vmul.f32 %v3335_v36, %v3021_v52  ;;  %v1150_v16 = vsub.f32 %v1137_v45, %v799_v13  ;;  %v4264_v52 = vmax.f32 %v3041_v6, 0.0 }
 0x20a   :  { %1593 = vrot.lane.b32.xlu0 %v3322_v43, %s2180_s20  ;;  %v798_v43 = vmul.f32 %v3375_v29, %v4263_v57  ;;  %v943_v17 = vand.u32 2147483647, %v930_v30  ;;  %v1163_v60 = vadd.f32 1e-06, %v1150_v16  ;;  %v800_v36 = vmul.f32 %v3410_v22, %v4264_v52 }
 0x20b   :  { %v3575_v38 = vpop.permute.xlu1 %779  ;;  %v945_v22 = vand.u32 2147483647, %v932_v1 }
 0x20c   :  { %4261 = vst [vmem:[#allocation47_spill] sm:$0xff] %v3575_v38  ;;  %v1149_v40 = vsub.f32 %v1136_v34, %v798_v43  ;;  %v1138_v7 = vadd.f32 %v3432_v14, %v943_v17  ;;  %v944_v38 = vand.u32 2147483647, %v931_v39  ;;  %2081 = vrcp.f32 %v1163_v60 }
 0x20e   :  { %v1162_v8 = vadd.f32 1e-06, %v1149_v40  ;;  %v1151_v30 = vsub.f32 %v1138_v7, %v800_v36  ;;  %v1139_v45 = vadd.f32 %v3486_v15, %v944_v38  ;;  %v4265_v40 = vmax.f32 %v3059_v41, 0.0 }
 0x20f   :  { %v1140_v15 = vadd.f32 %v3488_v47, %v945_v22  ;;  %v4266_v41 = vmax.f32 %v3076_v49, 0.0  ;;  %v2181_v49 = vmov 0.0  }
 0x210   :  { %2083 = vrcp.f32 %v1162_v8  ;;  %v801_v24 = vmul.f32 %v3467_v58, %v4265_v40  ;;  %v1164_v34 = vadd.f32 1e-06, %v1151_v30  ;;  %v933_v30 = vmul.f32 %v3448_v0, %v3074_v63 }
 0x211   :  { %v3610_v26 = vmul.f32 %v3469_v33, %v4266_v41 }
 0x212   :  { %v3582_v18 = vpop.permute.xlu1 %1117  ;;  %v1152_v6 = vsub.f32 %v1139_v45, %v801_v24  ;;  %2085 = vrcp.f32 %v1164_v34  ;;  %v946_v34 = vand.u32 2147483647, %v933_v30 }
 0x213   :  { %v1153_v8 = vsub.f32 %v1140_v15, %v3610_v26 }
 0x214   :  { %v1165_v39 = vadd.f32 1e-06, %v1152_v6  ;;  %v1141_v63 = vadd.f32 %v3521_v12, %v946_v34 }
 0x215   :  { %v1166_v45 = vadd.f32 1e-06, %v1153_v8 }
 0x216   :  { %v1217_v29 = vpop.permute.xlu1 %1216  ;;  %v2082_v17 = vpop.eup %2081  ;;  %2087 = vrcp.f32 %v1165_v39 }
 0x217   :  { %v1178_v60 = vmul.f32 %v2082_v17, %v799_v13  ;;  %2089 = vrcp.f32 %v1166_v45 }
 0x218   :  { %v3592_v57 = vpop.permute.xlu0 %913 }
 0x219   :  { %vm1254_vm0 = vcmp.gt.f32.partialorder %v1178_v60, %v1217_v29 }
 0x21a   :  { %v3600_v9 = vpop.permute.xlu1 %1119  ;;  %v2084_v48 = vpop.eup %2083  ;;  %v2021_v33 = vsel %vm1254_vm0, 1.0, %v2181_v49 }
 0x21b   :  { %v1176_v52 = vmul.f32 %v2084_v48, %v798_v43  ;;  %v1345_v22 = vsub.f32 1.0, %v2021_v33  ;;  %v934_v43 = vmul.f32 %v3493_v61, %v3091_v31  ;;  %v4267_v48 = vmax.f32 %v3093_v11, 0.0 }
 0x21c   :  { %v1215_v14 = vpop.permute.xlu0 %1214  ;;  %v2086_v40 = vpop.eup %2085  ;;  %v935_v11 = vmul.f32 %v3495_v5, %v3108_v3 }
 0x21d   :  { %vm1253_vm1 = vcmp.gt.f32.partialorder %v1176_v52, %v1215_v14  ;;  %v1180_v29 = vmul.f32 %v2086_v40, %v800_v36  ;;  %v3625_v41 = vmul.f32 %v3513_v54, %v4267_v48  ;;  %v947_v45 = vand.u32 2147483647, %v934_v43 }
 0x21e   :  { %v2020_v6 = vsel %vm1253_vm1, 1.0, %v2181_v49  ;;  %v4268_v40 = vmax.f32 %v3110_v51, 0.0  ;;  %vm1761_vm1 = vcmask 7168  }
 0x21f   :  { %v1344_v39 = vsub.f32 1.0, %v2020_v6  ;;  %v1154_v31 = vsub.f32 %v1141_v63, %v3625_v41  ;;  %v1142_v54 = vadd.f32 %v3523_v37, %v947_v45 }
 0x220   :  { %v3602_v16 = vpop.permute.xlu0 %781  ;;  %v2088_v15 = vpop.eup %2087 }
 0x221   :  { %v1182_v12 = vmul.f32 %v2088_v15, %v801_v24  ;;  %v3637_v24 = vmul.f32 %v3515_v2, %v4268_v40 }
 0x222   :  { %v3605_v38 = vpop.permute.xlu1 %783 }
 0x223   :  { %v1155_v3 = vsub.f32 %v1142_v54, %v3637_v24  ;;  %v4270_v54 = vld [vmem:[#allocation52_spill] sm:$0xff] }
 0x224   :  { %v1219_v58 = vpop.permute.xlu0 %1218 }
 0x225   :  { %vm1255_vm2 = vcmp.gt.f32.partialorder %v1180_v29, %v1219_v58 }
 0x226   :  { %v1221_v7 = vpop.permute.xlu1 %1220 }
 0x227   :  { %vm1256_vm3 = vcmp.gt.f32.partialorder %v1182_v12, %v1221_v7 }
 0x228   :  { %v3615_v47 = vpop.permute.xlu0 %1121  ;;  %v2023_v5 = vsel %vm1256_vm3, 1.0, %v2181_v49 }
 0x229   :  { %v1347_v29 = vsub.f32 1.0, %v2023_v5 }
 0x22a   :  { %v1295_v1 = vpop.permute.xlu1 %1294 }
 0x22b   :  { %v1332_v14 = vmul.f32 %v2021_v33, %v1295_v1  ;;  %v2022_v1 = vsel %vm1255_vm2, 1.0, %v2181_v49  ;;  %v1167_v33 = vadd.f32 1e-06, %v1154_v31  ;;  %vm1785_vm2 = vcmask 1024  }
 0x22c   :  { %v1293_v13 = vpop.permute.xlu0 %1292 }
 0x22d   :  { %v1331_v8 = vmul.f32 %v2020_v6, %v1293_v13  ;;  %v1346_v13 = vsub.f32 1.0, %v2022_v1  ;;  %v2090_v6 = vpop.eup %2089  ;;  %2091 = vrcp.f32 %v1167_v33 }
 0x22e   :  { %v1360_v0 = vpop.permute.xlu1 %1359  ;;  %v1184_v63 = vmul.f32 %v2090_v6, %v3610_v26 }
 0x22f   :  { %v1397_v17 = vmul.f32 %v1360_v0, %v1345_v22  ;;  %v948_v22 = vand.u32 2147483647, %v935_v11 }
 0x230   :  { %v1358_v60 = vpop.permute.xlu0 %1357 }
 0x231   :  { %v1410_v52 = vadd.f32 %v1397_v17, %v1332_v14  ;;  %v1396_v30 = vmul.f32 %v1358_v60, %v1344_v39  ;;  %v1143_v51 = vadd.f32 %v3548_v28, %v948_v22  ;;  %v1168_v14 = vadd.f32 1e-06, %v1155_v3 }
 0x232   :  { %v1297_v61 = vpop.permute.xlu1 %1296  ;;  %v936_v17 = vmul.f32 %v3529_v56, %v3130_v10  ;;  %v4269_v39 = vmax.f32 %v3127_v4, 0.0  ;;  %v937_v4 = vmul.f32 %v3531_v25, %v3146_v44 }
 0x233   :  { %v1409_v36 = vadd.f32 %v1396_v30, %v1331_v8  ;;  %1437 = vrot.lane.b32.xlu1 %v1410_v52, %s2182_s21  ;;  %v1333_v43 = vmul.f32 %v2022_v1, %v1297_v61  ;;  %2093 = vrcp.f32 %v1168_v14  ;;  %v4271_v1 = vmax.f32 %v4270_v54, 0.0  ;;  %v4280_v54 = vld [vmem:[#allocation48_spill] sm:$0xff] }
 0x234   :  { %v1223_v58 = vpop.permute.xlu0 %1222  ;;  %v3652_v15 = vmul.f32 %v3538_v27, %v4269_v39  ;;  %v949_v10 = vand.u32 2147483647, %v936_v17  ;;  %v950_v11 = vand.u32 2147483647, %v937_v4  ;;  %v4278_v4 = vld [vmem:[#allocation47_spill] sm:$0xff] }
 0x235   :  { %1435 = vrot.lane.b32.xlu0 %v1409_v36, %s2182_s21  ;;  %vm1257_vm4 = vcmp.gt.f32.partialorder %v1184_v63, %v1223_v58  ;;  %v3680_v58 = vmul.f32 %v3540_v23, %v4271_v1  ;;  %v4273_v23 = vmax.f32 %v3181_v32, 0.0  ;;  %v4281_v1 = vmax.f32 %v4280_v54, 0.0 }
 0x236   :  { %v3639_v34 = vpop.permute.xlu1 %1224  ;;  %v1156_v28 = vsub.f32 %v1143_v51, %v3652_v15  ;;  %v2024_v56 = vsel %vm1257_vm4, 1.0, %v2181_v49  ;;  %v1144_v61 = vadd.f32 %v3550_v62, %v949_v10  ;;  %v1145_v6 = vadd.f32 %v3586_v42, %v950_v11  ;;  %v4276_v10 = vld [vmem:[#allocation16_spill] sm:$0xff] }
 0x237   :  { %v1348_v25 = vsub.f32 1.0, %v2024_v56  ;;  %v2092_v36 = vpop.eup %2091 }
 0x238   :  { %v1362_v37 = vpop.permute.xlu0 %1361  ;;  %v1169_v31 = vadd.f32 1e-06, %v1156_v28  ;;  %v1157_v62 = vsub.f32 %v1144_v61, %v3680_v58  ;;  %v1186_v3 = vmul.f32 %v2092_v36, %v3625_v41 }
 0x239   :  { %v1398_v7 = vmul.f32 %v1362_v37, %v1346_v13  ;;  %1597 = vrot.lane.b32.xlu0 %v3382_v19, %s2180_s20  ;;  %v4272_v37 = vld [vmem:[#allocation27_spill] sm:$0xff] }
 0x23a   :  { %v1364_v2 = vpop.permute.xlu1 %1363  ;;  %2095 = vrcp.f32 %v1169_v31  ;;  %vm1258_vm5 = vcmp.gt.f32.partialorder %v1186_v3, %v3639_v34  ;;  %v4274_v34 = vld [vmem:[#allocation12_spill] sm:$0xff] }
 0x23b   :  { %v1411_v0 = vadd.f32 %v1398_v7, %v1333_v43  ;;  %v1399_v60 = vmul.f32 %v1364_v2, %v1347_v29  ;;  %v938_v43 = vmul.f32 %v3560_v21, %v4272_v37  ;;  %v3692_v7 = vmul.f32 %v3573_v53, %v4273_v23 }
 0x23c   :  { %v1299_v48 = vpop.permute.xlu0 %1298  ;;  %v1170_v2 = vadd.f32 1e-06, %v1157_v62  ;;  %v2025_v21 = vsel %vm1258_vm5, 1.0, %v2181_v49  ;;  %v939_v29 = vmul.f32 %v4274_v34, %v3224_v55 }
 0x23d   :  { %v1334_v8 = vmul.f32 %v2023_v5, %v1299_v48  ;;  %1439 = vrot.lane.b32.xlu1 %v1411_v0, %s2182_s21  ;;  %1599 = vrot.lane.b32.xlu0 %v3421_v50, %s2180_s20  ;;  %v2094_v42 = vpop.eup %2093  ;;  %v1158_v41 = vsub.f32 %v1145_v6, %v3692_v7  ;;  %v951_v0 = vand.u32 2147483647, %v938_v43  ;;  %v1349_v28 = vsub.f32 1.0, %v2025_v21 }
 0x23e   :  { %v3658_v26 = vpop.permute.xlu1 %1226  ;;  %v1188_v53 = vmul.f32 %v2094_v42, %v3637_v24  ;;  %2097 = vrcp.f32 %v1170_v2  ;;  %v4277_v24 = vmax.f32 %v4276_v10, 0.0  ;;  %v952_v36 = vand.u32 2147483647, %v939_v29  ;;  %v4282_v42 = vld [vmem:[#allocation44_spill] sm:$0xff]  ;;  %v4283_v2 = vld [vmem:[#allocation45_spill] sm:$0xff] }
 0x23f   :  { %v1412_v52 = vadd.f32 %v1399_v60, %v1334_v8  ;;  %v1171_v14 = vadd.f32 1e-06, %v1158_v41  ;;  %v1146_v17 = vadd.f32 %v3582_v18, %v951_v0  ;;  %v4275_v60 = vld [vmem:[#allocation7_spill] sm:$0xff] }
 0x240   :  { %v1809_v27 = vpop.permute.xlu0 %1808  ;;  %vm1259_vm6 = vcmp.gt.f32.partialorder %v1188_v53, %v3658_v26  ;;  %v4284_v26 = vmax.f32 %v4283_v2, 0.0 }
 0x241   :  { %v3664_v30 = vsub.f32 %v3373_v20, %v1809_v27  ;;  %v3667_v45 = vadd.f32 %v1809_v27, %v3373_v20  ;;  %1441 = vrot.lane.b32.xlu1 %v1412_v52, %s2182_s21  ;;  %1601 = vrot.lane.b32.xlu0 %v3453_v35, %s2180_s20  ;;  %v4279_v27 = vld [vmem:[#allocation26_spill] sm:$0xff]  ;;  %2099 = vrcp.f32 %v1171_v14  ;;  %v2026_v3 = vsel %vm1259_vm6, 1.0, %v2181_v49 }
 0x242   :  { %v1366_v12 = vpop.permute.xlu1 %1365  ;;  %v940_v31 = vmul.f32 %v3592_v57, %v4279_v27  ;;  %v810_v41 = vmul.f32 %v3605_v38, %v4284_v26  ;;  %vm16_vm6 = vcmask 0  }
 0x243   :  { %v3675_v44 = vsub.f32 %v3667_v45, %v3664_v30  ;;  %v1400_v40 = vmul.f32 %v1366_v12, %v1348_v25  ;;  %17 = vst.msk [vmem:[#allocation2] sm:$0x1] %vm16_vm6, %v2181_v49 }
 0x244   :  { %v1301_v33 = vpop.permute.xlu0 %1300  ;;  %v2096_v52 = vpop.eup %2095  ;;  %v953_v6 = vand.u32 2147483647, %v940_v31 }
 0x245   :  { %v1335_v13 = vmul.f32 %v2024_v56, %v1301_v33  ;;  %1831 = vrot.lane.b32.xlu1 %v3675_v44, %s2176_s9  ;;  %v3713_v56 = vmul.f32 %v4278_v4, %v4277_v24  ;;  %v3724_v33 = vmul.f32 %v3602_v16, %v4281_v1 }
 0x246   :  { %v1855_v22 = vpop.permute.xlu1 %1854 }
 0x247   :  { %v1413_v5 = vadd.f32 %v1400_v40, %v1335_v13  ;;  %v1857_v18 = vmin.f32 %v3667_v45, %v1855_v22  ;;  %v1159_v11 = vsub.f32 %v1146_v17, %v3713_v56  ;;  %v1190_v13 = vmul.f32 %v2096_v52, %v3652_v15 }
 0x248   :  { %v1850_v51 = vpop.permute.xlu0 %1849  ;;  %v1147_v22 = vadd.f32 %v3600_v9, %v952_v36  ;;  %v1148_v15 = vadd.f32 %v3615_v47, %v953_v6  ;;  %v2098_v9 = vpop.eup %2097  ;;  %v4288_v6 = vld [vmem:[#allocation18_spill] sm:$0xff] }
 0x249   :  { %1443 = vrot.lane.b32.xlu0 %v1413_v5, %s2182_s21  ;;  %1603 = vrot.lane.b32.xlu1 %v3476_v59, %s2180_s20  ;;  %v1852_v48 = vmax.f32 %v3664_v30, %v1850_v51  ;;  %v1172_v16 = vadd.f32 1e-06, %v1159_v11  ;;  %v1350_v51 = vsub.f32 1.0, %v2026_v3  ;;  %v1192_v29 = vmul.f32 %v2098_v9, %v3680_v58  ;;  %v4286_v58 = vld [vmem:[#allocation15_spill] sm:$0xff] }
 0x24a   :  { %v1303_v63 = vpop.permute.xlu1 %1302  ;;  %v1160_v37 = vsub.f32 %v1147_v22, %v3724_v33  ;;  %v1161_v53 = vsub.f32 %v1148_v15, %v810_v41 }
 0x24b   :  { %v1336_v61 = vmul.f32 %v2025_v21, %v1303_v63  ;;  %v3726_v57 = vsub.f32 %v1857_v18, %v1852_v48  ;;  %2101 = vrcp.f32 %v1172_v16  ;;  %v2100_v38 = vpop.eup %2099 }
 0x24c   :  { %v1229_v32 = vpop.permute.xlu0 %1228  ;;  %v1173_v47 = vadd.f32 1e-06, %v1160_v37  ;;  %v1174_v52 = vadd.f32 1e-06, %v1161_v53  ;;  %v1194_v24 = vmul.f32 %v2100_v38, %v3692_v7  ;;  %v4289_v38 = vld [vmem:[#allocation31_spill] sm:$0xff] }
 0x24d   :  { %1605 = vrot.lane.b32.xlu1 %v3500_v46, %s2180_s20  ;;  %vm1260_vm7 = vcmp.gt.f32.partialorder %v1190_v13, %v1229_v32  ;;  %v1859_v23 = vmax.f32 %v3726_v57, 0.0  ;;  %v3862_v57 = vld [vmem:[%s4006_s1 + $0x50] sm:$0xff] }
 0x24e   :  { %v1839_v39 = vpop.permute.xlu1 %1838  ;;  %v2027_v63 = vsel %vm1260_vm7, 1.0, %v2181_v49  ;;  %2103 = vrcp.f32 %v1173_v47 }
 0x24f   :  { %v3708_v8 = vmul.f32 %v1839_v39, %v4275_v60  ;;  %v1351_v17 = vsub.f32 1.0, %v2027_v63  ;;  %v4285_v39 = vld [vmem:[#allocation17_spill] sm:$0xff]  ;;  %2105 = vrcp.f32 %v1174_v52 }
 0x250   :  { %v1368_v55 = vpop.permute.xlu0 %1367 }
 0x251   :  { %v1842_v12 = vand.u32 2147483647, %v3708_v8  ;;  %v1401_v25 = vmul.f32 %v1368_v55, %v1349_v28 }
 0x252   :  { %v1305_v40 = vpop.permute.xlu1 %1304 }
 0x253   :  { %v1414_v62 = vadd.f32 %v1401_v25, %v1336_v61  ;;  %1866 = vrot.lane.b32.xlu1 %v1842_v12, %s2174_s7  ;;  %v1337_v21 = vmul.f32 %v2026_v3, %v1305_v40  ;;  %v4287_v61 = vld [vmem:[#allocation25_spill] sm:$0xff] }
 0x254   :  { %v1231_v5 = vpop.permute.xlu0 %1230 }
 0x255   :  { %1445 = vrot.lane.b32.xlu0 %v1414_v62, %s2182_s21  ;;  %vm1261_vm8 = vcmp.gt.f32.partialorder %v1192_v29, %v1231_v5  ;;  %v2102_v25 = vpop.eup %2101 }
 0x256   :  { %v1233_v43 = vpop.permute.xlu1 %1232  ;;  %v2028_v27 = vsel %vm1261_vm8, 1.0, %v2181_v49  ;;  %v1196_v40 = vmul.f32 %v2102_v25, %v3713_v56  ;;  %v4291_v25 = vld [vmem:[#allocation28_spill] sm:$0xff] }
 0x257   :  { %1607 = vrot.lane.b32.xlu1 %v4282_v42, %s2180_s20  ;;  %vm1262_vm9 = vcmp.gt.f32.partialorder %v1194_v24, %v1233_v43  ;;  %v1352_v18 = vsub.f32 1.0, %v2028_v27 }
 0x258   :  { %v1370_v0 = vpop.permute.xlu0 %1369  ;;  %v2029_v36 = vsel %vm1262_vm9, 1.0, %v2181_v49  ;;  %v2104_v22 = vpop.eup %2103 }
 0x259   :  { %v1402_v32 = vmul.f32 %v1370_v0, %v1350_v51  ;;  %1861 = vrot.lane.b32.xlu0 %v1859_v23, %s2176_s9  ;;  %v1353_v62 = vsub.f32 1.0, %v2029_v36  ;;  %v1198_v15 = vmul.f32 %v2104_v22, %v3724_v33  ;;  %v2106_v51 = vpop.eup %2105  ;;  %v2132_v22 = vld [vmem:[%s4006_s1 + $0x10] sm:$0xff] }
 0x25a   :  { %v1372_v34 = vpop.permute.xlu1 %1371  ;;  %v1200_v2 = vmul.f32 %v2106_v51, %v810_v41  ;;  %v1820_v41 = vmax.f32 %v3664_v30, %v4289_v38  ;;  %v4293_v51 = vld [vmem:[#allocation29_spill] sm:$0xff] }
 0x25b   :  { %v1415_v14 = vadd.f32 %v1402_v32, %v1337_v21  ;;  %1609 = vrot.lane.b32.xlu1 %v4285_v39, %s2180_s20  ;;  %v1403_v60 = vmul.f32 %v1372_v34, %v1351_v17 }
 0x25c   :  { %v1307_v48 = vpop.permute.xlu0 %1306 }
 0x25d   :  { %v1338_v28 = vmul.f32 %v2027_v63, %v1307_v48  ;;  %1447 = vrot.lane.b32.xlu0 %v1415_v14, %s2182_s21  ;;  %v4290_v48 = vld [vmem:[#allocation46_spill] sm:$0xff] }
 0x25e   :  { %v1309_v10 = vpop.permute.xlu1 %1308 }
 0x25f   :  { %v1416_v4 = vadd.f32 %v1403_v60, %v1338_v28  ;;  %1611 = vrot.lane.b32.xlu1 %v4286_v58, %s2180_s20  ;;  %v1339_v11 = vmul.f32 %v2028_v27, %v1309_v10  ;;  %v1821_v60 = vmin.f32 %v3667_v45, %v4290_v48  ;;  %v2130_v45 = vld [vmem:[%s4006_s1 + $0x8] sm:$0xff] }
 0x260   :  { %v1235_v31 = vpop.permute.xlu0 %1234 }
 0x261   :  { %1449 = vrot.lane.b32.xlu0 %v1416_v4, %s2182_s21  ;;  %vm1263_vm10 = vcmp.gt.f32.partialorder %v1196_v40, %v1235_v31  ;;  %v3776_v27 = vsub.f32 %v1821_v60, %v1820_v41  ;;  %v1527_v31 = vsub.f32 1.0, %v2130_v45 }
 0x262   :  { %v1237_v55 = vpop.permute.xlu1 %1236  ;;  %v2030_v9 = vsel %vm1263_vm10, 1.0, %v2181_v49 }
 0x263   :  { %1613 = vrot.lane.b32.xlu1 %v4287_v61, %s2180_s20  ;;  %vm1264_vm11 = vcmp.gt.f32.partialorder %v1198_v15, %v1237_v55  ;;  %v1354_v26 = vsub.f32 1.0, %v2030_v9  ;;  %v1823_v30 = vmax.f32 %v3776_v27, 0.0 }
 0x264   :  { %v1374_v7 = vpop.permute.xlu0 %1373  ;;  %v2031_v0 = vsel %vm1264_vm11, 1.0, %v2181_v49 }
 0x265   :  { %v1404_v54 = vmul.f32 %v1374_v7, %v1352_v18  ;;  %v1355_v34 = vsub.f32 1.0, %v2031_v0  ;;  %v2131_v18 = vld [vmem:[%s4006_s1] sm:$0xff] }
 0x266   :  { %v1376_v1 = vpop.permute.xlu1 %1375  ;;  %v1526_v61 = vsub.f32 1.0, %v2131_v18 }
 0x267   :  { %v1417_v13 = vadd.f32 %v1404_v54, %v1339_v11  ;;  %1615 = vrot.lane.b32.xlu1 %v4288_v6, %s2180_s20  ;;  %v1405_v5 = vmul.f32 %v1376_v1, %v1353_v62  ;;  %v4292_v54 = vld [vmem:[#allocation5_spill] sm:$0xff] }
 0x268   :  { %v1311_v3 = vpop.permute.xlu0 %1310  ;;  %v1539_v1 = vmul.f32 %v4292_v54, %v1526_v61  ;;  %v1552_v40 = vmul.f32 %v2131_v18, %v1526_v61  ;;  %v1487_v38 = vmul.f32 %v2131_v18, %v4292_v54 }
 0x269   :  { %v1340_v16 = vmul.f32 %v2029_v36, %v1311_v3  ;;  %1451 = vrot.lane.b32.xlu0 %v1417_v13, %s2182_s21  ;;  %v1540_v36 = vmul.f32 %v4291_v25, %v1527_v31  ;;  %v1528_v3 = vsub.f32 1.0, %v2132_v22 }
 0x26a   :  { %v1313_v37 = vpop.permute.xlu1 %1312 }
 0x26b   :  { %v1418_v43 = vadd.f32 %v1405_v5, %v1340_v16  ;;  %v1341_v32 = vmul.f32 %v2030_v9, %v1313_v37  ;;  %v1565_v5 = vsub.f32 %v1539_v1, %v1552_v40  ;;  %v1541_v9 = vmul.f32 %v4293_v51, %v1528_v3 }
 0x26c   :  { %v1239_v56 = vpop.permute.xlu0 %1238 }
 0x26d   :  { %1453 = vrot.lane.b32.xlu0 %v1418_v43, %s2182_s21  ;;  %vm1265_vm12 = vcmp.gt.f32.partialorder %v1200_v2, %v1239_v56  ;;  %v1554_v56 = vmul.f32 %v2132_v22, %v1528_v3  ;;  %v2133_v2 = vld [vmem:[%s4006_s1 + $0x18] sm:$0xff] }
 0x26e   :  { %v1315_v63 = vpop.permute.xlu1 %1314  ;;  %v2032_v33 = vsel %vm1265_vm12, 1.0, %v2181_v49 }
 0x26f   :  { %v1342_v14 = vmul.f32 %v2031_v0, %v1315_v63  ;;  %v1356_v52 = vsub.f32 1.0, %v2032_v33  ;;  %v1578_v63 = vmul.f32 %v1565_v5, %v1565_v5 }
 0x270   :  { %v1378_v21 = vpop.permute.xlu0 %1377 }
 0x271   :  { %v1406_v47 = vmul.f32 %v1378_v21, %v1354_v26  ;;  %v1529_v26 = vsub.f32 1.0, %v2133_v2 }
 0x272   :  { %v1317_v39 = vpop.permute.xlu1 %1316 }
 0x273   :  { %v1419_v53 = vadd.f32 %v1406_v47, %v1341_v32  ;;  %v1343_v24 = vmul.f32 %v2032_v33, %v1317_v39  ;;  %v1488_v47 = vmul.f32 %v2130_v45, %v4291_v25  ;;  %v1542_v33 = vmul.f32 %v3382_v19, %v1529_v26 }
 0x274   :  { %v1380_v29 = vpop.permute.xlu0 %1379 }
 0x275   :  { %v1407_v17 = vmul.f32 %v1380_v29, %v1355_v34  ;;  %1455 = vrot.lane.b32.xlu0 %v1419_v53, %s2182_s21  ;;  %v1567_v53 = vsub.f32 %v1541_v9, %v1554_v56  ;;  %v1555_v29 = vmul.f32 %v2133_v2, %v1529_v26 }
 0x276   :  { %v1592_v11 = vpop.permute.xlu1 %1591 }
 0x277   :  { %v1420_v28 = vadd.f32 %v1407_v17, %v1342_v14  ;;  %v1630_v13 = vmul.f32 %v1592_v11, %v1526_v61 }
 0x278   :  { %v1382_v10 = vpop.permute.xlu0 %1381 }
 0x279   :  { %v1408_v4 = vmul.f32 %v1382_v10, %v1356_v52  ;;  %1457 = vrot.lane.b32.xlu0 %v1420_v28, %s2182_s21  ;;  %v1643_v16 = vsub.f32 %v1630_v13, %v1552_v40  ;;  %v1580_v52 = vmul.f32 %v1567_v53, %v1567_v53  ;;  %v1568_v10 = vsub.f32 %v1542_v33, %v1555_v29 }
 0x27a   :  { %v1596_v37 = vpop.permute.xlu1 %1595 }
 0x27b   :  { %v1421_v58 = vadd.f32 %v1408_v4, %v1343_v24  ;;  %v1656_v0 = vmul.f32 %v1643_v16, %v1643_v16  ;;  %v1632_v21 = vmul.f32 %v1596_v37, %v1528_v3  ;;  %v2134_v24 = vld [vmem:[%s4006_s1 + $0x20] sm:$0xff]  ;;  %v1581_v40 = vmul.f32 %v1568_v10, %v1568_v10  ;;  %v2136_v10 = vld [vmem:[%s4006_s1 + $0x30] sm:$0xff] }
 0x27c   :  { %v1594_v55 = vpop.permute.xlu0 %1593  ;;  %v1530_v4 = vsub.f32 1.0, %v2134_v24  ;;  %v1490_v37 = vmul.f32 %v2133_v2, %v3382_v19 }
 0x27d   :  { %1459 = vrot.lane.b32.xlu1 %v1421_v58, %s2182_s21  ;;  %1880 = vrot.lane.b32.xlu0 %v3373_v20, %s2180_s20  ;;  %v1553_v20 = vmul.f32 %v2130_v45, %v1527_v31  ;;  %v1631_v7 = vmul.f32 %v1594_v55, %v1527_v31  ;;  %v1669_v14 = vadd.f32 %v1656_v0, %v1578_v63 }
 0x27e   :  { %v1645_v17 = vsub.f32 %v1632_v21, %v1554_v56  ;;  %v1543_v11 = vmul.f32 %v3421_v50, %v1530_v4 }
 0x27f   :  { %v1566_v62 = vsub.f32 %v1540_v36, %v1553_v20  ;;  %v1644_v6 = vsub.f32 %v1631_v7, %v1553_v20  ;;  %v1683_v58 = vmul.f32 0.5, %v1669_v14  ;;  %v1489_v7 = vmul.f32 %v2132_v22, %v4293_v51 }
 0x280   :  { %v1658_v31 = vmul.f32 %v1645_v17, %v1645_v17 }
 0x281   :  { %1825 = vrot.lane.b32.xlu1 %v1823_v30, %s2176_s9  ;;  %v1579_v15 = vmul.f32 %v1566_v62, %v1566_v62  ;;  %v1657_v43 = vmul.f32 %v1644_v6, %v1644_v6 }
 0x282   :  { %v1671_v54 = vadd.f32 %v1658_v31, %v1580_v52 }
 0x283   :  { %v1670_v32 = vadd.f32 %v1657_v43, %v1579_v15 }
 0x284   :  { %v1685_v43 = vmul.f32 0.5, %v1671_v54 }
 0x285   :  { %v1684_v48 = vmul.f32 0.5, %v1670_v32  ;;  %v2135_v32 = vld [vmem:[%s4006_s1 + $0x28] sm:$0xff] }
 0x2a5   :  { %v1438_v34 = vpop.permute.xlu1 %1437 }
 0x2a6   :  { %v1475_v39 = vmul.f32 %v2130_v45, %v1438_v34 }
 0x2a7   :  { %v1436_v41 = vpop.permute.xlu0 %1435 }
 0x2a8   :  { %v1501_v60 = vsub.f32 %v1475_v39, %v1488_v47  ;;  %v1474_v28 = vmul.f32 %v2131_v18, %v1436_v41  ;;  %v1556_v18 = vmul.f32 %v2134_v24, %v1530_v4  ;;  %v1491_v39 = vmul.f32 %v2134_v24, %v3421_v50 }
 0x2aa   :  { %v1514_v55 = vmul.f32 %v1501_v60, %v1501_v60  ;;  %v1500_v61 = vsub.f32 %v1474_v28, %v1487_v38  ;;  %v1569_v15 = vsub.f32 %v1543_v11, %v1556_v18 }
 0x2ab   :  { %v1598_v25 = vpop.permute.xlu0 %1597 }
 0x2ac   :  { %v1697_v36 = vadd.f32 %v1684_v48, %v1514_v55  ;;  %v1513_v45 = vmul.f32 %v1500_v61, %v1500_v61  ;;  %v1633_v20 = vmul.f32 %v1598_v25, %v1529_v26  ;;  %v1582_v21 = vmul.f32 %v1569_v15, %v1569_v15 }
 0x2ae   :  { %v1696_v1 = vadd.f32 %v1683_v58, %v1513_v45  ;;  %1724 = vrot.lane.b32.xlu0 %v1697_v36, %s2183_s4  ;;  %v1646_v13 = vsub.f32 %v1633_v20, %v1555_v29 }
 0x2af   :  { %v1440_v62 = vpop.permute.xlu1 %1439  ;;  %v1600_v6 = vpop.permute.xlu0 %1599 }
 0x2b0   :  { %v1476_v3 = vmul.f32 %v2132_v22, %v1440_v62  ;;  %v1659_v5 = vmul.f32 %v1646_v13, %v1646_v13  ;;  %1722 = vrot.lane.b32.xlu1 %v1696_v1, %s2183_s4  ;;  %v1634_v16 = vmul.f32 %v1600_v6, %v1530_v4  ;;  %v1531_v22 = vsub.f32 1.0, %v2135_v32 }
 0x2b1   :  { %v1532_v4 = vsub.f32 1.0, %v2136_v10 }
 0x2b2   :  { %v1502_v51 = vsub.f32 %v1476_v3, %v1489_v7  ;;  %v1672_v9 = vadd.f32 %v1659_v5, %v1581_v40  ;;  %v1647_v56 = vsub.f32 %v1634_v16, %v1556_v18  ;;  %v1544_v17 = vmul.f32 %v3453_v35, %v1531_v22 }
 0x2b3   :  { %v1442_v26 = vpop.permute.xlu1 %1441  ;;  %v1602_v47 = vpop.permute.xlu0 %1601  ;;  %v1557_v41 = vmul.f32 %v2135_v32, %v1531_v22  ;;  %v1545_v36 = vmul.f32 %v3476_v59, %v1532_v4  ;;  %v1558_v45 = vmul.f32 %v2136_v10, %v1532_v4  ;;  %v1492_v16 = vmul.f32 %v2135_v32, %v3453_v35 }
 0x2b4   :  { %v1515_v63 = vmul.f32 %v1502_v51, %v1502_v51  ;;  %v1477_v0 = vmul.f32 %v2133_v2, %v1442_v26  ;;  %v1686_v34 = vmul.f32 0.5, %v1672_v9  ;;  %v1660_v29 = vmul.f32 %v1647_v56, %v1647_v56 }
 0x2b5   :  { %v1635_v48 = vmul.f32 %v1602_v47, %v1531_v22  ;;  %v1570_v31 = vsub.f32 %v1544_v17, %v1557_v41  ;;  %v1571_v1 = vsub.f32 %v1545_v36, %v1558_v45  ;;  %v1493_v17 = vmul.f32 %v2136_v10, %v3476_v59 }
 0x2b6   :  { %v1698_v53 = vadd.f32 %v1685_v43, %v1515_v63  ;;  %v1503_v33 = vsub.f32 %v1477_v0, %v1490_v37  ;;  %v1673_v38 = vadd.f32 %v1660_v29, %v1582_v21  ;;  %v3831_v43 = vld [vmem:[%s4006_s1 + $0x40] sm:$0xff] }
 0x2b7   :  { %v1832_v19 = vpop.permute.xlu1 %1831  ;;  %v1648_v55 = vsub.f32 %v1635_v48, %v1557_v41  ;;  %v1583_v7 = vmul.f32 %v1570_v31, %v1570_v31  ;;  %v1534_v51 = vsub.f32 1.0, %v3831_v43  ;;  %v1584_v9 = vmul.f32 %v1571_v1, %v1571_v1 }
 0x2b8   :  { %v1516_v14 = vmul.f32 %v1503_v33, %v1503_v33  ;;  %1726 = vrot.lane.b32.xlu0 %v1698_v53, %s2183_s4  ;;  %v1687_v58 = vmul.f32 0.5, %v1673_v38  ;;  %v3843_v29 = vmul.f32 %v1832_v19, %v3675_v44  ;;  %v2140_v44 = vld [vmem:[%s4005_s0 + $0x48] sm:$0xff] }
 0x2b9   :  { %v1661_v11 = vmul.f32 %v1648_v55, %v1648_v55  ;;  %v1547_v35 = vmul.f32 %v4282_v42, %v1534_v51 }
 0x2ba   :  { %v1699_v2 = vadd.f32 %v1686_v34, %v1516_v14  ;;  %v3839_v34 = vld [vmem:[%s4006_s1 + $0x48] sm:$0xff] }
 0x2bb   :  { %v1444_v60 = vpop.permute.xlu0 %1443  ;;  %v1604_v28 = vpop.permute.xlu1 %1603  ;;  %v1674_v6 = vadd.f32 %v1661_v11, %v1583_v7  ;;  %v1535_v33 = vsub.f32 1.0, %v3839_v34 }
 0x2bc   :  { %v1478_v52 = vmul.f32 %v2134_v24, %v1444_v60  ;;  %1728 = vrot.lane.b32.xlu1 %v1699_v2, %s2183_s4  ;;  %v2137_v24 = vld [vmem:[%s4006_s1 + $0x38] sm:$0xff]  ;;  %v1636_v54 = vmul.f32 %v1604_v28, %v1532_v4 }
 0x2bd   :  { %v1533_v20 = vsub.f32 1.0, %v2137_v24  ;;  %v1688_v63 = vmul.f32 0.5, %v1674_v6  ;;  %v1548_v19 = vmul.f32 %v2140_v44, %v1535_v33  ;;  %v1561_v31 = vmul.f32 %v3839_v34, %v1535_v33 }
 0x2be   :  { %v1504_v61 = vsub.f32 %v1478_v52, %v1491_v39  ;;  %v1649_v3 = vsub.f32 %v1636_v54, %v1558_v45  ;;  %v1494_v52 = vmul.f32 %v2137_v24, %v3500_v46 }
 0x2bf   :  { %v1606_v25 = vpop.permute.xlu1 %1605  ;;  %v1546_v40 = vmul.f32 %v3500_v46, %v1533_v20  ;;  %v1559_v13 = vmul.f32 %v2137_v24, %v1533_v20  ;;  %v1574_v54 = vsub.f32 %v1548_v19, %v1561_v31 }
 0x2c0   :  { %v1517_v50 = vmul.f32 %v1504_v61, %v1504_v61  ;;  %v1637_v5 = vmul.f32 %v1606_v25, %v1533_v20  ;;  %v1662_v0 = vmul.f32 %v1649_v3, %v1649_v3 }
 0x2c1   :  { %v1572_v56 = vsub.f32 %v1546_v40, %v1559_v13 }
 0x2c2   :  { %v1700_v18 = vadd.f32 %v1687_v58, %v1517_v50  ;;  %v1650_v21 = vsub.f32 %v1637_v5, %v1559_v13  ;;  %v1675_v39 = vadd.f32 %v1662_v0, %v1584_v9  ;;  %v1835_v58 = vand.u32 2147483647, %v3843_v29 }
 0x2c3   :  { %v1585_v14 = vmul.f32 %v1572_v56, %v1572_v56  ;;  %v1587_v9 = vmul.f32 %v1574_v54, %v1574_v54 }
 0x2c4   :  { %1730 = vrot.lane.b32.xlu0 %v1700_v18, %s2183_s4  ;;  %v1663_v2 = vmul.f32 %v1650_v21, %v1650_v21 }
 0x2c5   :  { %v1867_v62 = vpop.permute.xlu1 %1866 }
 0x2c6   :  { %v1676_v61 = vadd.f32 %v1663_v2, %v1585_v14  ;;  %v1869_v46 = vadd.f32 %v1867_v62, %v1835_v58 }
 0x2c7   :  { %v1446_v37 = vpop.permute.xlu0 %1445 }
 0x2c8   :  { %v1479_v15 = vmul.f32 %v2135_v32, %v1446_v37  ;;  %v1560_v32 = vmul.f32 %v3831_v43, %v1534_v51  ;;  %v1690_v40 = vmul.f32 0.5, %v1676_v61  ;;  %v3874_v37 = vld [vmem:[%s4006_s1 + $0x58] sm:$0xff]  ;;  %v2146_v61 = vld [vmem:[%s4005_s0 + $0x60] sm:$0x3] }
 0x2c9   :  { %v1608_v26 = vpop.permute.xlu1 %1607 }
 0x2ca   :  { %v1505_v22 = vsub.f32 %v1479_v15, %v1492_v16  ;;  %v1638_v41 = vmul.f32 %v1608_v26, %v1534_v51  ;;  %v1573_v4 = vsub.f32 %v1547_v35, %v1560_v32  ;;  %v1537_v15 = vsub.f32 1.0, %v3874_v37 }
 0x2cb   :  { %v1862_v47 = vpop.permute.xlu0 %1861 }
 0x2cc   :  { %v1518_v53 = vmul.f32 %v1505_v22, %v1505_v22  ;;  %v3854_v59 = vmul.f32 %v1862_v47, %v1859_v23  ;;  %v1651_v50 = vsub.f32 %v1638_v41, %v1560_v32  ;;  %v1536_v23 = vsub.f32 1.0, %v3862_v57  ;;  %v2144_v32 = vld [vmem:[%s4005_s0 + $0x58] sm:$0xff] }
 0x2cd   :  { %v1610_v48 = vpop.permute.xlu1 %1609  ;;  %v1586_v18 = vmul.f32 %v1573_v4, %v1573_v4  ;;  %v1495_v22 = vmul.f32 %v3831_v43, %v4282_v42  ;;  %v1563_v14 = vmul.f32 %v3874_v37, %v1537_v15  ;;  %v2145_v42 = vld [vmem:[%s4006_s1 + $0x60] sm:$0x3]  ;;  %v1496_v41 = vmul.f32 %v2140_v44, %v3839_v34 }
 0x2ce   :  { %v1701_v38 = vadd.f32 %v1688_v63, %v1518_v53  ;;  %v1639_v55 = vmul.f32 %v1610_v48, %v1535_v33  ;;  %v1870_v11 = vsub.f32 %v1869_v46, %v3854_v59  ;;  %v1664_v62 = vmul.f32 %v1651_v50, %v1651_v50 }
 0x2cf   :  { %v1448_v60 = vpop.permute.xlu0 %1447  ;;  %v1562_v16 = vmul.f32 %v3862_v57, %v1536_v23  ;;  %v1550_v33 = vmul.f32 %v2144_v32, %v1537_v15  ;;  %v1538_v2 = vsub.f32 1.0, %v2145_v42 }
 0x2d0   :  { %v1480_v28 = vmul.f32 %v2136_v10, %v1448_v60  ;;  %1732 = vrot.lane.b32.xlu1 %v1701_v38, %s2183_s4  ;;  %v1689_v10 = vmul.f32 0.5, %v1675_v39  ;;  %v1652_v1 = vsub.f32 %v1639_v55, %v1561_v31  ;;  %v1871_v51 = vadd.f32 1e-06, %v1870_v11 }
 0x2d1   :  { %v1612_v45 = vpop.permute.xlu1 %1611  ;;  %v1677_v21 = vadd.f32 %v1664_v62, %v1586_v18  ;;  %v1576_v31 = vsub.f32 %v1550_v33, %v1563_v14  ;;  %v1564_v50 = vmul.f32 %v2145_v42, %v1538_v2 }
 0x2d2   :  { %v1506_v25 = vsub.f32 %v1480_v28, %v1493_v17  ;;  %v1665_v56 = vmul.f32 %v1652_v1, %v1652_v1  ;;  %v1640_v26 = vmul.f32 %v1612_v45, %v1536_v23  ;;  %2107 = vrcp.f32 %v1871_v51 }
 0x2d3   :  { %v1450_v36 = vpop.permute.xlu0 %1449  ;;  %v1691_v38 = vmul.f32 0.5, %v1677_v21  ;;  %v1589_v18 = vmul.f32 %v1576_v31, %v1576_v31 }
 0x2d4   :  { %v1519_v20 = vmul.f32 %v1506_v25, %v1506_v25  ;;  %v1481_v7 = vmul.f32 %v2137_v24, %v1450_v36  ;;  %v2142_v24 = vld [vmem:[%s4005_s0 + $0x50] sm:$0xff]  ;;  %v1678_v17 = vadd.f32 %v1665_v56, %v1587_v9  ;;  %v1653_v39 = vsub.f32 %v1640_v26, %v1562_v16 }
 0x2d5   :  { %v1549_v5 = vmul.f32 %v2142_v24, %v1536_v23  ;;  %v1614_v63 = vpop.permute.xlu1 %1613  ;;  %v1551_v25 = vmul.f32 %v2146_v61, %v1538_v2 }
 0x2d6   :  { %v1702_v13 = vadd.f32 %v1689_v10, %v1519_v20  ;;  %v1507_v6 = vsub.f32 %v1481_v7, %v1494_v52  ;;  %v1641_v48 = vmul.f32 %v1614_v63, %v1537_v15  ;;  %v1692_v55 = vmul.f32 0.5, %v1678_v17 }
 0x2d7   :  { %v1575_v35 = vsub.f32 %v1549_v5, %v1562_v16  ;;  %v1666_v10 = vmul.f32 %v1653_v39, %v1653_v39  ;;  %v1577_v23 = vsub.f32 %v1551_v25, %v1564_v50  ;;  %v1498_v5 = vmul.f32 %v2144_v32, %v3874_v37 }
 0x2d8   :  { %v1520_v3 = vmul.f32 %v1507_v6, %v1507_v6  ;;  %1734 = vrot.lane.b32.xlu0 %v1702_v13, %s2183_s4  ;;  %v1654_v45 = vsub.f32 %v1641_v48, %v1563_v14  ;;  %v1499_v63 = vmul.f32 %v2146_v61, %v2145_v42 }
 0x2d9   :  { %v1616_v28 = vpop.permute.xlu1 %1615  ;;  %v1588_v19 = vmul.f32 %v1575_v35, %v1575_v35 }
 0x2da   :  { %v1703_v0 = vadd.f32 %v1690_v40, %v1520_v3  ;;  %v1642_v44 = vmul.f32 %v1616_v28, %v1538_v2  ;;  %v1667_v54 = vmul.f32 %v1654_v45, %v1654_v45  ;;  %v1590_v3 = vmul.f32 %v1577_v23, %v1577_v23 }
 0x2db   :  { %v1452_v47 = vpop.permute.xlu0 %1451  ;;  %v1679_v7 = vadd.f32 %v1666_v10, %v1588_v19  ;;  %v1843_v28 = vadd.f32 %v1842_v12, %v1835_v58 }
 0x2dc   :  { %v1482_v53 = vmul.f32 %v3831_v43, %v1452_v47  ;;  %1736 = vrot.lane.b32.xlu1 %v1703_v0, %s2183_s4  ;;  %v1655_v1 = vsub.f32 %v1642_v44, %v1564_v50  ;;  %v2108_v40 = vpop.eup %2107  ;;  %v1680_v15 = vadd.f32 %v1667_v54, %v1589_v18 }
 0x2dd   :  { %v1693_v62 = vmul.f32 0.5, %v1679_v7  ;;  %v1873_v16 = vmul.f32 %v2108_v40, %v3854_v59  ;;  %v3905_v59 = vld [vmem:[%s4005_s0 + $0x61] sm:$0x1] }
 0x2de   :  { %v1508_v43 = vsub.f32 %v1482_v53, %v1495_v22  ;;  %v1694_v0 = vmul.f32 0.5, %v1680_v15 }
 0x2df   :  { %v1454_v60 = vpop.permute.xlu0 %1453 }
 0x2e0   :  { %v1521_v52 = vmul.f32 %v1508_v43, %v1508_v43  ;;  %v1483_v4 = vmul.f32 %v3839_v34, %v1454_v60  ;;  %v1497_v34 = vmul.f32 %v2142_v24, %v3862_v57  ;;  %v1668_v24 = vmul.f32 %v1655_v1, %v1655_v1 }
 0x2e2   :  { %v1704_v46 = vadd.f32 %v1691_v38, %v1521_v52  ;;  %v1509_v36 = vsub.f32 %v1483_v4, %v1496_v41  ;;  %v1681_v21 = vadd.f32 %v1668_v24, %v1590_v3 }
 0x2e4   :  { %v1522_v20 = vmul.f32 %v1509_v36, %v1509_v36  ;;  %1738 = vrot.lane.b32.xlu0 %v1704_v46, %s2183_s4 }
 0x2e6   :  { %v1705_v11 = vadd.f32 %v1692_v55, %v1522_v20 }
 0x2e7   :  { %v1456_v13 = vpop.permute.xlu0 %1455 }
 0x2e8   :  { %v1484_v6 = vmul.f32 %v3862_v57, %v1456_v13  ;;  %1740 = vrot.lane.b32.xlu1 %v1705_v11, %s2183_s4 }
 0x2ea   :  { %v1510_v51 = vsub.f32 %v1484_v6, %v1497_v34 }
 0x2eb   :  { %v1458_v9 = vpop.permute.xlu0 %1457 }
 0x2ec   :  { %v1523_v56 = vmul.f32 %v1510_v51, %v1510_v51  ;;  %v1485_v26 = vmul.f32 %v3874_v37, %v1458_v9  ;;  %1875 = vrot.lane.b32.xlu1 %v1873_v16, %s2180_s20  ;;  %v1695_v37 = vmul.f32 0.5, %v1681_v21 }
 0x2ee   :  { %v1706_v57 = vadd.f32 %v1693_v62, %v1523_v56  ;;  %v1511_v22 = vsub.f32 %v1485_v26, %v1498_v5 }
 0x2ef   :  { %v1460_v47 = vpop.permute.xlu1 %1459  ;;  %v3910_v17 = vpop.permute.xlu0 %1880 }
 0x2f0   :  { %v1524_v53 = vmul.f32 %v1511_v22, %v1511_v22  ;;  %v1486_v35 = vmul.f32 %v2145_v42, %v1460_v47  ;;  %1742 = vrot.lane.b32.xlu0 %v1706_v57, %s2183_s4  ;;  %1891 = vrot.lane.b32.xlu1 %v3905_v59, %s2173_s17  ;;  %v3917_v42 = vld [vmem:[%s4006_s1 + $0x61] sm:$0x1]  ;;  %s2187_s1 = smov 1  }
 0x2f1   :  { %v1982_v2 = vsub.f32 %v3917_v42, %v3910_v17  ;;  %vm1905_vm5 = vcmp.eq.f32.partialorder %v3917_v42, 0.0  ;;  %vm1930_vm7 = vcmp.eq.f32.partialorder %v3917_v42, inf }
 0x2f2   :  { %v1707_v32 = vadd.f32 %v1694_v0, %v1524_v53  ;;  %v1512_v33 = vsub.f32 %v1486_v35, %v1499_v63 }
 0x2f3   :  { %v1983_v38 = vmul.f32 %v1982_v2, %v1982_v2  ;;  %v1826_v43 = vpop.permute.xlu1 %1825 }
 0x2f4   :  { %v1525_v14 = vmul.f32 %v1512_v33, %v1512_v33  ;;  %1744 = vrot.lane.b32.xlu0 %v1707_v32, %s2183_s4  ;;  %v1828_v48 = vmul.f32 %v1826_v43, %v1823_v30 }
 0x2f6   :  { %v1708_v39 = vadd.f32 %v1695_v37, %v1525_v14  ;;  %v1844_v4 = vsub.f32 %v1843_v28, %v1828_v48 }
 0x2f8   :  { %1746 = vrot.lane.b32.xlu1 %v1708_v39, %s2183_s4  ;;  %1894 = vrot.lane.b32.xlu0 %v3905_v59, %s2184_s13  ;;  %s2186_s4 = smov 122   ;;  %v1845_v55 = vadd.f32 1e-06, %v1844_v4 }
 0x2fa   :  { %2109 = vrcp.f32 %v1845_v55 }
 0x2fc   :  { %1901 = vrot.lane.b32.xlu1 %v3905_v59, %s2182_s21  ;;  %1898 = vrot.lane.b32.xlu0 %v3905_v59, %s2185_s15 }
 0x300   :  { %1985 = vrot.lane.b32.xlu0 %v1983_v38, %s2180_s20  ;;  %1884 = vrot.lane.b32.xlu1 %v3905_v59, %s2176_s9 }
 0x304   :  { %1887 = vrot.lane.b32.xlu0 %v3905_v59, %s2186_s4  ;;  %v2110_v27 = vpop.eup %2109 }
 0x305   :  { %v3937_v29 = vmul.f32 %v2110_v27, %v1828_v48 }
 0x320   :  { %v1725_v41 = vpop.permute.xlu0 %1724 }
 0x321   :  { %v1763_v6 = vsel %vm1761_vm1, %v1725_v41, 0.0 }
 0x322   :  { %v1723_v60 = vpop.permute.xlu1 %1722 }
 0x323   :  { %v1762_v13 = vsel %vm1761_vm1, %v1723_v60, 0.0 }
 0x324   :  { %v1764_v16 = vadd.f32 %v1763_v6, %v1762_v13 }
 0x32a   :  { %v1727_v52 = vpop.permute.xlu0 %1726 }
 0x32b   :  { %v1765_v62 = vsel %vm1761_vm1, %v1727_v52, 0.0 }
 0x32c   :  { %v1766_v51 = vadd.f32 %v1765_v62, %v1764_v16 }
 0x32e   :  { %v1729_v19 = vpop.permute.xlu1 %1728 }
 0x32f   :  { %v1767_v15 = vsel %vm1761_vm1, %v1729_v19, 0.0  ;;  %v2188_v19 = vmov 0  }
 0x330   :  { %v1768_v56 = vadd.f32 %v1767_v15, %v1766_v51  ;;  %v1682_v51 = vld [vmem:[#allocation2] sm:$0x1] }
 0x336   :  { %v1731_v31 = vpop.permute.xlu0 %1730 }
 0x337   :  { %v1769_v9 = vsel %vm1761_vm1, %v1731_v31, 0.0  ;;  %v1906_v31 = vsel %vm1905_vm5, 1, %v2188_v19 }
 0x338   :  { %v1770_v63 = vadd.f32 %v1769_v9, %v1768_v56 }
 0x342   :  { %v1733_v10 = vpop.permute.xlu1 %1732 }
 0x343   :  { %v1771_v26 = vsel %vm1761_vm1, %v1733_v10, 0.0 }
 0x344   :  { %v1772_v57 = vadd.f32 %v1771_v26, %v1770_v63 }
 0x34a   :  { %v1735_v61 = vpop.permute.xlu0 %1734 }
 0x34b   :  { %v1773_v0 = vsel %vm1761_vm1, %v1735_v61, 0.0  ;;  %v1933_v61 = vand.u32 2147483648, %v3917_v42 }
 0x34c   :  { %v1774_v22 = vadd.f32 %v1773_v0, %v1772_v57 }
 0x34e   :  { %v1737_v25 = vpop.permute.xlu1 %1736 }
 0x34f   :  { %v1775_v21 = vsel %vm1761_vm1, %v1737_v25, 0.0 }
 0x350   :  { %v1776_v53 = vadd.f32 %v1775_v21, %v1774_v22 }
 0x356   :  { %v1739_v50 = vpop.permute.xlu0 %1738 }
 0x357   :  { %v1777_v47 = vsel %vm1761_vm1, %v1739_v50, 0.0 }
 0x358   :  { %v1778_v37 = vadd.f32 %v1777_v47, %v1776_v53 }
 0x35a   :  { %v1741_v46 = vpop.permute.xlu1 %1740 }
 0x35b   :  { %v1779_v35 = vsel %vm1761_vm1, %v1741_v46, 0.0 }
 0x35c   :  { %v1780_v33 = vadd.f32 %v1779_v35, %v1778_v37 }
 0x35e   :  { %v3935_v30 = vpop.permute.xlu1 %1875 }
 0x35f   :  { %vm1878_vm13 = vcmp.ge.f32.partialorder %v3937_v29, %v3935_v30 }
 0x360   :  { %v1883_v26 = vsel %vm1878_vm13, %v3905_v59, %v3910_v17  ;;  %v2189_v59 = vmov 1.0  }
 0x361   :  { %v1920_v57 = vsub.f32 %v3917_v42, %v1883_v26 }
 0x362   :  { %v1743_v36 = vpop.permute.xlu0 %1742  ;;  %v1892_v8 = vpop.permute.xlu1 %1891 }
 0x363   :  { %v1781_v32 = vsel %vm1761_vm1, %v1743_v36, 0.0  ;;  %v1921_v21 = vmul.f32 %v1920_v57, %v1920_v57 }
 0x364   :  { %v1782_v2 = vadd.f32 %v1781_v32, %v1780_v33 }
 0x366   :  { %v1745_v45 = vpop.permute.xlu0 %1744 }
 0x367   :  { %v1783_v14 = vsel %vm1761_vm1, %v1745_v45, 0.0 }
 0x368   :  { %v1784_v43 = vadd.f32 %v1783_v14, %v1782_v2 }
 0x36a   :  { %v1895_v12 = vpop.permute.xlu0 %1894  ;;  %v1747_v1 = vpop.permute.xlu1 %1746 }
 0x36b   :  { %v1897_v58 = vsel %vm1878_vm13, %v1892_v8, %v1895_v12  ;;  %v1786_v38 = vsel %vm1785_vm2, %v1747_v1, 0.0 }
 0x36c   :  { %2111 = vrsqrt.f32 %v1897_v58  ;;  %vm1937_vm15 = vcmp.eq.f32.partialorder %v1897_v58, inf  ;;  %v1940_v11 = vand.u32 2147483648, %v1897_v58  ;;  %vm1939_vm0 = vcmp.eq.f32.partialorder %v1897_v58, 0.0 }
 0x36d   :  { %v1787_v41 = vadd.f32 %v1786_v38, %v1784_v43 }
 0x36e   :  { %v1899_v44 = vpop.permute.xlu0 %1898  ;;  %v1902_v40 = vpop.permute.xlu1 %1901 }
 0x36f   :  { %v1904_v39 = vsel %vm1878_vm13, %v1899_v44, %v1902_v40 }
 0x370   :  { %2113 = vrsqrt.f32 %v1904_v39  ;;  %vm1950_vm3 = vcmp.eq.f32.partialorder %v1904_v39, inf  ;;  %v1953_v52 = vand.u32 2147483648, %v1904_v39  ;;  %vm1952_vm4 = vcmp.eq.f32.partialorder %v1904_v39, 0.0 }
 0x371   :  { %2115 = vrsqrt.f32 %v3917_v42 }
 0x372   :  { %v1986_v20 = vpop.permute.xlu0 %1985  ;;  %v1885_v3 = vpop.permute.xlu1 %1884 }
 0x373   :  { %v1989_v7 = vsel %vm1988_vm14, %v1986_v20, 0.0 }
 0x374   :  { %1990 = vadd.xlane.f32.xlu0 %v1989_v7 }
 0x376   :  { %v2112_v34 = vpop.eup %2111  ;;  %v1888_v5 = vpop.permute.xlu0 %1887 }
 0x377   :  { %v1936_v23 = vmul.f32 %v2112_v34, %v1897_v58  ;;  %v1890_v24 = vsel %vm1878_vm13, %v1885_v3, %v1888_v5 }
 0x379   :  { %v1938_v18 = vsel %vm1937_vm15, %v1897_v58, %v1936_v23 }
 0x37a   :  { %v1941_v54 = vsel %vm1939_vm0, %v1940_v11, %v1938_v18  ;;  %v2114_v48 = vpop.eup %2113 }
 0x37b   :  { %1943 = vrot.lane.b32.xlu1 %v1941_v54, %s2175_s8  ;;  %v1949_v60 = vmul.f32 %v2114_v48, %v1904_v39  ;;  %v2116_v55 = vpop.eup %2115 }
 0x37c   :  { %v1929_v10 = vmul.f32 %v3917_v42, %v2116_v55 }
 0x37d   :  { %v1951_v28 = vsel %vm1950_vm3, %v1904_v39, %v1949_v60 }
 0x37e   :  { %v1954_v4 = vsel %vm1952_vm4, %v1953_v52, %v1951_v28  ;;  %v1931_v25 = vsel %vm1930_vm7, %v3917_v42, %v1929_v10 }
 0x37f   :  { %v1934_v50 = vsel %vm1905_vm5, %v1933_v61, %v1931_v25 }
 0x38a   :  { %1923 = vrot.lane.b32.xlu0 %v1890_v24, %s2187_s1 }
 0x39f   :  { %1788 = vadd.xlane.f32.xlu1 %v1787_v41 }
 0x3b0   :  { %1956 = vrot.lane.b32.xlu1 %v1954_v4, %s2178_s24 }
 0x3b4   :  { %1907 = vrot.lane.b32.xlu1 %v1906_v31, %s2176_s9 }
 0x3ed   :  { %v1944_v46 = vpop.permute.xlu1 %1943 }
 0x3ee   :  { %v1946_v36 = vsub.f32 %v1934_v50, %v1944_v46 }
 0x3f0   :  { %v1947_v27 = vmul.f32 %v1946_v36, %v1946_v36 }
 0x3f2   :  { %vm1961_vm8 = vcmp.ne.f32.partialorder %v1947_v27, %v1947_v27 }
 0x3f3   :  { %v1962_v45 = vsel %vm1961_vm8, 0.0, %v1947_v27 }
 0x3f4   :  { %1971 = vrot.lane.b32.xlu1 %v1962_v45, %s2173_s17 }
 0x401   :  { %v1991_v8 = vpop.xlane.xlu0 %1990 }
 0x402   :  { %v1992_v49 = vrot.slane %v1991_v8, 4 }
 0x404   :  { %v1993_v20 = vadd.f32 %v1992_v49, %v1991_v8 }
 0x405   :  { %v1924_v12 = vpop.permute.xlu0 %1923 }
 0x406   :  { %v1926_v58 = vsub.f32 %v3917_v42, %v1924_v12  ;;  %v1994_v7 = vrot.slane %v1993_v20, 2 }
 0x408   :  { %v1927_v44 = vmul.f32 %v1926_v58, %v1926_v58  ;;  %v1995_v54 = vadd.f32 %v1994_v7, %v1993_v20 }
 0x40a   :  { %1966 = vrot.lane.b32.xlu0 %v1927_v44, %s2176_s9  ;;  %v1996_v62 = vrot.slane %v1995_v54, 1  ;;  %s2190_s9 = smov [#allocation2]  }
 0x40b   :  { %s2012_s24 = sshll.u32 %s2190_s9, 4  ;;  %s2013_s24 = int_to_ptr.vmem [resolvable:$true] %s2012_s24 }
 0x40c   :  { %v1997_v15 = vadd.f32 %v1996_v62, %v1995_v54  ;;  %s2149_s20 = scalar_lea.vmem %s2013_s24, 16  ;;  %s2153_s21 = scalar_lea.vmem %s2013_s24, 32 }
 0x40d   :  { %p2150_p0 = scmp.ne.s32.totalorder %s2013_s24, %s2149_s20  ;;  %p2154_p1 = scmp.lt.s32.totalorder %s2013_s24, %s2013_s24 }
 0x40e   :  { %1911 = vrot.lane.b32.xlu0 %v1906_v31, %s2173_s17  ;;  %p2155_p2 = scmp.lt.s32.totalorder %s2153_s21, %s2149_s20 }
 0x410   :  { %p2156_p3 = por %p2155_p2, %p2154_p1 }
 0x412   :  { %1915 = vrot.lane.b32.xlu0 %v1906_v31, %s2185_s15  ;;  %p2157_p4 = pnand %p2156_p3, %p2150_p0 }
 0x42c   :  { %v1789_v34 = vpop.xlane.xlu1 %1788 }
 0x42d   :  { %v1790_v23 = vrot.slane %v1789_v34, 4 }
 0x42f   :  { %v1791_v11 = vadd.f32 %v1790_v23, %v1789_v34 }
 0x430   :  { %v1957_v18 = vpop.permute.xlu1 %1956 }
 0x431   :  { %v1792_v1 = vrot.slane %v1791_v11, 2  ;;  %v1959_v40 = vsub.f32 %v1934_v50, %v1957_v18 }
 0x433   :  { %v1960_v13 = vmul.f32 %v1959_v40, %v1959_v40  ;;  %v1793_v6 = vadd.f32 %v1792_v1, %v1791_v11 }
 0x434   :  { %v1908_v0 = vpop.permute.xlu1 %1907 }
 0x435   :  { %vm1963_vm9 = vcmp.ne.f32.partialorder %v1960_v13, %v1960_v13  ;;  %v1794_v3 = vrot.slane %v1793_v6, 1  ;;  %vm1909_vm10 = vcmp.ne.s32.totalorder %v1908_v0, 0 }
 0x436   :  { %v1964_v5 = vsel %vm1963_vm9, 0.0, %v1960_v13  ;;  %vm1910_vm11 = vmand %vm1905_vm5, %vm1909_vm10 }
 0x437   :  { %1976 = vrot.lane.b32.xlu1 %v1964_v5, %s2185_s15  ;;  %v1795_v16 = vadd.f32 %v1794_v3, %v1793_v6 }
 0x439   :  { %2033 = vpush %v1795_v16 }
 0x43a   :  { %2035 = vpush %v1997_v15 }
 0x466   :  { %v1972_v53 = vpop.permute.xlu1 %1971 }
 0x46a   :  { %s2034_s17 = spop %2033 }
 0x46b   :  { %v1797_v24 = vstv %s2034_s17  ;;  %s2036_s8 = spop %2035 }
 0x46c   :  { %v1798_v9 = vadd.f32 %v1797_v24, %v1682_v51  ;;  %v1999_v33 = vstv %s2036_s8 }
 0x46e   :  { %1800 = vst.msk [vmem:[#allocation2] sm:$0x1] %vm16_vm6, %v1798_v9 }
 0x475   :  { %v2001_v2 = vld [vmem:[#allocation2] sm:$0x1] }
 0x47c   :  { %v1967_v56 = vpop.permute.xlu0 %1966 }
 0x47d   :  { %v1969_v47 = vadd.f32 %v1967_v56, %v1921_v21 }
 0x47f   :  { %v1974_v35 = vadd.f32 %v1972_v53, %v1969_v47 }
 0x480   :  { %v1912_v63 = vpop.permute.xlu0 %1911 }
 0x481   :  { %vm1913_vm12 = vcmp.ne.s32.totalorder %v1912_v63, 0 }
 0x482   :  { %vm1914_vm14 = vmand %vm1910_vm11, %vm1913_vm12 }
 0x484   :  { %v1916_v22 = vpop.permute.xlu0 %1915 }
 0x485   :  { %vm1917_vm15 = vcmp.ne.s32.totalorder %v1916_v22, 0 }
 0x486   :  { %vm1918_vm0 = vmand %vm1914_vm14, %vm1917_vm15 }
 0x487   :  { %v1919_v17 = vsel %vm1918_vm0, 0.0, %v2189_v59 }
 0x488   :  { %v2000_v14 = vmul.f32 %v1999_v33, %v1919_v17 }
 0x4a9   :  { %v1977_v37 = vpop.permute.xlu1 %1976 }
 0x4aa   :  { %v1979_v30 = vadd.f32 %v1977_v37, %v1974_v35 }
 0x4ac   :  { %v1980_v29 = vmul.f32 %v1979_v30, %v1919_v17 }
 0x4ae   :  { %v1981_v32 = vmul.f32 5.0, %v1980_v29 }
 0x4b0   :  { %v2002_v42 = vmul.f32 5.0, %v1981_v32 }
 0x4b2   :  { %v2003_v39 = vadd.f32 %v2002_v42, %v2000_v14 }
 0x4b4   :  { %v2004_v38 = vadd.f32 %v2003_v39, %v2001_v2 }
 0x4b6   :  { %2005 = vst.msk [vmem:[#allocation2] sm:$0x1] %vm16_vm6, %v2004_v38 }
 0x4b7   :  { %2160 = shalt.err (!%p2157_p4)
}
 0x4b8   :  { %s2161_s19 = scalar_lea.hbm %s4007_s2, 16 }
 0x4b9   :  { %p2162_p5 = scmp.ne.s32.totalorder %s4007_s2, %s2161_s19  ;;  %p2165_p6 = scmp.lt.u32.totalorder %s2161_s19, %s4007_s2 }
 0x4bb   :  { %p2167_p7 = pnand %p2165_p6, %p2162_p5 }
 0x4bd   :  { %2170 = shalt.err (!%p2167_p7)
}
 0x4be   :  { %2015 = dma.vmem_to_hbm [thread:$0]  %s2013_s24, 16, %s4007_s2, [#allocation3]  }
 0x4bf   :  { %2171 = dma.done.wait [#allocation3], 16  }
 0x4c0   :  { %2172 = vsyncadd [#allocation3], 4294967280 }
 0x4c1   :  { %2019 = vsyncpa [#allocation3], 1 }

</bundles_post_ra>
